<compile_context>
chip_gen: v5e
topology: v5e:2x2
jax: 0.10.0
libtpu: 0.0.40
codegen_flags: <defaults>
</compile_context>

<pallas_src>
import functools

import jax
import jax.numpy as jnp
from jax import lax
from jax.experimental import pallas as pl
from jax.experimental.pallas import tpu as pltpu

BN_EPS = 1e-5  # nn.BatchNorm2d default


# ---------------------------------------------------------------------------
# Small helpers
# ---------------------------------------------------------------------------
def _vmem_limit_bytes():
    # Generation-aware VMEM cap: v5e/v6e have 128 MiB physical VMEM, v7x has 64 MiB.
    try:
        cap = int(getattr(pltpu.get_tpu_info(), "vmem_capacity_bytes",
                          128 * 1024 * 1024))
    except Exception:  # pragma: no cover - interpret mode / older runtimes
        cap = 128 * 1024 * 1024
    return int(min(96 * 1024 * 1024, cap * 3 // 4))


def _cparams():
    return pltpu.CompilerParams(dimension_semantics=("parallel",),
                                vmem_limit_bytes=_vmem_limit_bytes())


def _mish(y):
    # mish(y) = y * tanh(softplus(y)), single exp:  t = e^y ;
    # tanh(log1p(t)) = (t^2 + 2t) / (t^2 + 2t + 2).  PyTorch softplus threshold=20.
    t = jnp.exp(jnp.minimum(y, 20.0))
    num = t * (t + 2.0)
    return jnp.where(y > 20.0, y, y * (num / (num + 2.0)))


def _row_tile(m, bytes_per_row, target_bytes=2 << 20):
    """Sublane-aligned row tile sized by a byte budget; keeps >=2 grid steps."""
    tm = max(8, min(m, target_bytes // max(1, bytes_per_row)))
    tm = max(8, (tm // 8) * 8)
    while tm > 8 and pl.cdiv(m, tm) < 2:
        tm = max(8, (tm // 2 // 8) * 8)
    return tm


# ---------------------------------------------------------------------------
# Kernel 1: fused channel split + conv_part1 + conv_part2 (1x1 conv + BN bias + Mish)
#   x slab (rows, W*C) bf16  ->  part1 (rows, W*half) bf16, part2 (rows, W*half) bf16
# The channel split is folded into zero-padded kron(I_W, w) weights.
# ---------------------------------------------------------------------------
def _split_conv_kernel(x_ref, w1_ref, b1_ref, w2_ref, b2_ref, o1_ref, o2_ref):
    x = x_ref[...]
    y1 = jnp.dot(x, w1_ref[...], preferred_element_type=jnp.float32) + b1_ref[...]
    y2 = jnp.dot(x, w2_ref[...], preferred_element_type=jnp.float32) + b2_ref[...]
    o1_ref[...] = _mish(y1).astype(o1_ref.dtype)
    o2_ref[...] = _mish(y2).astype(o2_ref.dtype)


def split_conv_pair(x_slab, packed):
    m, wc_in = x_slab.shape
    wh = packed["split_w1"].shape[1]
    tm = _row_tile(m, wc_in * 2 + 2 * wh * 2)
    return pl.pallas_call(
        _split_conv_kernel,
        out_shape=(jax.ShapeDtypeStruct((m, wh), jnp.bfloat16),
                   jax.ShapeDtypeStruct((m, wh), jnp.bfloat16)),
        grid=(pl.cdiv(m, tm),),
        in_specs=[
            pl.BlockSpec((tm, wc_in), lambda i: (i, 0)),
            pl.BlockSpec(packed["split_w1"].shape, lambda i: (0, 0)),
            pl.BlockSpec(packed["split_b1"].shape, lambda i: (0, 0)),
            pl.BlockSpec(packed["split_w2"].shape, lambda i: (0, 0)),
            pl.BlockSpec(packed["split_b2"].shape, lambda i: (0, 0)),
        ],
        out_specs=(pl.BlockSpec((tm, wh), lambda i: (i, 0)),
                   pl.BlockSpec((tm, wh), lambda i: (i, 0))),
        compiler_params=_cparams(),
    )(x_slab, packed["split_w1"], packed["split_b1"],
      packed["split_w2"], packed["split_b2"])


# ---------------------------------------------------------------------------
# Kernel 2: ALL BottleNeck repeats fused, one image per grid step.
#   part2 image (H, W*half) stays resident in VMEM across every repeat.
#   3x3 conv = sum over dy of (row-shifted hidden) @ block-tridiagonal weight.
# ---------------------------------------------------------------------------
def _bottleneck_kernel(x_ref, w1_ref, b1_ref, w2_ref, b2_ref, o_ref, *,
                       n_rows, repeats, use_residual):
    # dy = +/-1 image-row shifts as exact 0/1 matmuls built in-kernel (iota);
    # they zero-pad the top/bottom rows automatically and ride the idle MXU.
    row = lax.broadcasted_iota(jnp.int32, (n_rows, n_rows), 0)
    col = lax.broadcasted_iota(jnp.int32, (n_rows, n_rows), 1)
    s_up = (col == row - 1).astype(jnp.bfloat16)   # (s_up @ h)[r] == h[r-1]
    s_dn = (col == row + 1).astype(jnp.bfloat16)   # (s_dn @ h)[r] == h[r+1]

    x = x_ref[...].astype(jnp.float32)             # (H, W*half); residual kept in f32
    # TODO(synk): for a large repeat count use lax.fori_loop over the stacked
    # weights (dynamic leading-axis ref index) to bound code size / live ranges.
    for r in range(repeats):
        hidden = _mish(jnp.dot(x.astype(jnp.bfloat16), w1_ref[r],
                               preferred_element_type=jnp.float32) + b1_ref[r])
        hidden = hidden.astype(jnp.bfloat16)       # (H, W*chid)
        h_up = jnp.dot(s_up, hidden, preferred_element_type=jnp.float32
                       ).astype(jnp.bfloat16)      # exact copy of hidden[h-1]
        h_dn = jnp.dot(s_dn, hidden, preferred_element_type=jnp.float32
                       ).astype(jnp.bfloat16)      # exact copy of hidden[h+1]
        acc = jnp.dot(h_up, w2_ref[3 * r + 0], preferred_element_type=jnp.float32)
        acc += jnp.dot(hidden, w2_ref[3 * r + 1], preferred_element_type=jnp.float32)
        acc += jnp.dot(h_dn, w2_ref[3 * r + 2], preferred_element_type=jnp.float32)
        y = _mish(acc + b2_ref[r])
        x = x + y if use_residual else y
    o_ref[...] = x.astype(o_ref.dtype)


def bottleneck_stack(p2_img, packed, *, use_residual):
    n, h_rows, wh = p2_img.shape
    repeats = packed["bn_w1"].shape[0]
    # TODO(synk): for production image sizes, tile over H rows (1-row halo) instead
    # of one full image per grid step so the block fits v7x's 64 MiB VMEM and both
    # TensorCores get more than N grid steps of work.
    return pl.pallas_call(
        functools.partial(_bottleneck_kernel, n_rows=h_rows, repeats=repeats,
                          use_residual=use_residual),
        out_shape=jax.ShapeDtypeStruct((n, h_rows, wh), jnp.bfloat16),
        grid=(n,),
        in_specs=[
            pl.BlockSpec((None, h_rows, wh), lambda i: (i, 0, 0)),
            pl.BlockSpec(packed["bn_w1"].shape, lambda i: (0, 0, 0)),
            pl.BlockSpec(packed["bn_b1"].shape, lambda i: (0, 0, 0)),
            pl.BlockSpec(packed["bn_w2"].shape, lambda i: (0, 0, 0)),
            pl.BlockSpec(packed["bn_b2"].shape, lambda i: (0, 0, 0)),
        ],
        out_specs=pl.BlockSpec((None, h_rows, wh), lambda i: (i, 0, 0)),
        compiler_params=_cparams(),
    )(p2_img, packed["bn_w1"], packed["bn_b1"], packed["bn_w2"], packed["bn_b2"])


# ---------------------------------------------------------------------------
# Kernel 3: fused concat + conv_out (part1 @ Wa + part2 @ Wb + bias -> Mish)
#   output slab (rows, W*Cout) is 128 lanes wide -> unmasked stores.
# ---------------------------------------------------------------------------
def _concat_out_kernel(p1_ref, p2_ref, wa_ref, wb_ref, b_ref, o_ref):
    acc = jnp.dot(p1_ref[...], wa_ref[...], preferred_element_type=jnp.float32)
    acc += jnp.dot(p2_ref[...], wb_ref[...], preferred_element_type=jnp.float32)
    o_ref[...] = _mish(acc + b_ref[...]).astype(o_ref.dtype)


def concat_conv_out(part1, part2, packed):
    m, wh = part1.shape
    wo = packed["out_wa"].shape[1]
    tm = _row_tile(m, 2 * wh * 2 + wo * 4)
    return pl.pallas_call(
        _concat_out_kernel,
        out_shape=jax.ShapeDtypeStruct((m, wo), jnp.float32),
        grid=(pl.cdiv(m, tm),),
        in_specs=[
            pl.BlockSpec((tm, wh), lambda i: (i, 0)),
            pl.BlockSpec((tm, wh), lambda i: (i, 0)),
            pl.BlockSpec(packed["out_wa"].shape, lambda i: (0, 0)),
            pl.BlockSpec(packed["out_wb"].shape, lambda i: (0, 0)),
            pl.BlockSpec(packed["out_b"].shape, lambda i: (0, 0)),
        ],
        out_specs=pl.BlockSpec((tm, wo), lambda i: (i, 0)),
        compiler_params=_cparams(),
    )(part1, part2, packed["out_wa"], packed["out_wb"], packed["out_b"])


# ---------------------------------------------------------------------------
# Parameters: eval-mode BN folded into conv weights at prep time.
# ---------------------------------------------------------------------------
def make_conv_bn_mish_params(key, cin, cout, ksize):
    kw_, kg, kb, km, kv = jax.random.split(key, 5)
    w = jax.random.normal(kw_, (ksize, ksize, cin, cout), jnp.float32) * 0.1
    gamma = 1.0 + 0.1 * jax.random.normal(kg, (cout,), jnp.float32)
    beta = 0.1 * jax.random.normal(kb, (cout,), jnp.float32)
    mean = 0.1 * jax.random.normal(km, (cout,), jnp.float32)
    var = 1.0 + 0.1 * jnp.abs(jax.random.normal(kv, (cout,), jnp.float32))
    scale = gamma / jnp.sqrt(var + BN_EPS)
    return {"w": w * scale, "bias": beta - mean * scale}    # (kh,kw,cin,cout), (cout,)


def init_csp_params(key, in_channels, out_channels, repeats):
    half = in_channels // 2
    hidden = half // 2
    keys = jax.random.split(key, 3 + 2 * repeats)
    return {
        "conv_part1": make_conv_bn_mish_params(keys[0], half, half, 1),
        "conv_part2": make_conv_bn_mish_params(keys[1], half, half, 1),
        "conv_out": make_conv_bn_mish_params(keys[2], in_channels, out_channels, 1),
        "bottlenecks": [
            {"conv1": make_conv_bn_mish_params(keys[3 + 2 * r], half, hidden, 1),
             "conv2": make_conv_bn_mish_params(keys[4 + 2 * r], hidden, half, 3)}
            for r in range(repeats)
        ],
    }


def pack_csp_params(params, W):
    """Build lane-dense, bf16, kron-packed weights for the Pallas path."""
    half = params["conv_part1"]["w"].shape[2]
    C = 2 * half
    eye_w = jnp.eye(W, dtype=jnp.float32)
    # output pixel w reads input pixel w + dx - 1 (pad 1): fold the dx shift + edge
    # zeroing into shift matrices S[w_in, w_out].
    s_dx = [jnp.eye(W, k=1, dtype=jnp.float32),    # dx = 0 : input pixel w-1
            eye_w,                                 # dx = 1 : input pixel w
            jnp.eye(W, k=-1, dtype=jnp.float32)]   # dx = 2 : input pixel w+1

    def pointwise_from_full(w_cc, cin_total, row_offset):
        full = jnp.zeros((cin_total, w_cc.shape[1]), jnp.float32)
        full = full.at[row_offset:row_offset + w_cc.shape[0]].set(w_cc)
        return jnp.kron(eye_w, full)

    def tile_bias(b):
        return jnp.tile(b, W).reshape(1, -1).astype(jnp.float32)

    packed = {
        "split_w1": pointwise_from_full(params["conv_part1"]["w"][0, 0], C, 0
                                        ).astype(jnp.bfloat16),
        "split_w2": pointwise_from_full(params["conv_part2"]["w"][0, 0], C, half
                                        ).astype(jnp.bfloat16),
        "split_b1": tile_bias(params["conv_part1"]["bias"]),
        "split_b2": tile_bias(params["conv_part2"]["bias"]),
    }

    bn_w1, bn_b1, bn_w2, bn_b2 = [], [], [], []
    for bp in params["bottlenecks"]:
        bn_w1.append(jnp.kron(eye_w, bp["conv1"]["w"][0, 0]))
        bn_b1.append(tile_bias(bp["conv1"]["bias"]))
        w2 = bp["conv2"]["w"]                                  # (3,3,chid,half)
        for dy in range(3):
            bn_w2.append(sum(jnp.kron(s_dx[dx], w2[dy, dx]) for dx in range(3)))
        bn_b2.append(tile_bias(bp["conv2"]["bias"]))
    if bn_w1:
        packed["bn_w1"] = jnp.stack(bn_w1).astype(jnp.bfloat16)   # (R, W*half, W*chid)
        packed["bn_b1"] = jnp.stack(bn_b1)                        # (R, 1, W*chid)
        packed["bn_w2"] = jnp.stack(bn_w2).astype(jnp.bfloat16)   # (3R, W*chid, W*half)
        packed["bn_b2"] = jnp.stack(bn_b2)                        # (R, 1, W*half)

    wo = params["conv_out"]["w"][0, 0]                            # (C, cout)
    packed["out_wa"] = jnp.kron(eye_w, wo[:half]).astype(jnp.bfloat16)
    packed["out_wb"] = jnp.kron(eye_w, wo[half:]).astype(jnp.bfloat16)
    packed["out_b"] = tile_bias(params["conv_out"]["bias"])
    return packed


# ---------------------------------------------------------------------------
# CSPBlock forward (Pallas path)
# ---------------------------------------------------------------------------
def csp_block_forward(x_nchw, packed, use_residual=True):
    n, c, h, w = x_nchw.shape
    half = packed["split_w1"].shape[1] // w
    cout = packed["out_wa"].shape[1] // w
    # TODO(synk): keep the surrounding model NHWC to avoid these two standalone
    # full-tensor transpose copies around the kernels.
    x_slab = jnp.transpose(x_nchw, (0, 2, 3, 1)).reshape(n * h, w * c).astype(jnp.bfloat16)

    part1, part2 = split_conv_pair(x_slab, packed)
    if "bn_w1" in packed:
        p2 = bottleneck_stack(part2.reshape(n, h, w * half), packed,
                              use_residual=use_residual)
        part2 = p2.reshape(n * h, w * half)

    out_slab = concat_conv_out(part1, part2, packed)
    return jnp.transpose(out_slab.reshape(n, h, w, cout), (0, 3, 1, 2))


# ---------------------------------------------------------------------------
# Pure-JAX reference of the same math (same bf16 cast points, f32 accumulation)
# ---------------------------------------------------------------------------
def _ref_forward(x_nchw, params, use_residual):
    n, c, H, W = x_nchw.shape
    half = c // 2

    def pw(x_nhwc, w_cc, bias):
        a = x_nhwc.astype(jnp.bfloat16).astype(jnp.float32)
        b = w_cc.astype(jnp.bfloat16).astype(jnp.float32)
        return jnp.einsum("nhwc,cd->nhwd", a, b) + bias

    x = jnp.transpose(x_nchw, (0, 2, 3, 1)).astype(jnp.bfloat16)
    part1 = _mish(pw(x[..., :half], params["conv_part1"]["w"][0, 0],
                     params["conv_part1"]["bias"])).astype(jnp.bfloat16)
    part2 = _mish(pw(x[..., half:], params["conv_part2"]["w"][0, 0],
                     params["conv_part2"]["bias"])).astype(jnp.bfloat16)
    p2 = part2.astype(jnp.float32)

    for bp in params["bottlenecks"]:
        hidden = _mish(pw(p2, bp["conv1"]["w"][0, 0], bp["conv1"]["bias"])
                       ).astype(jnp.bfloat16)
        hp = jnp.pad(hidden, ((0, 0), (1, 1), (1, 1), (0, 0)))
        acc = jnp.zeros_like(p2)
        for dy in range(3):
            for dx in range(3):
                acc = acc + pw(hp[:, dy:dy + H, dx:dx + W, :],
                               bp["conv2"]["w"][dy, dx], 0.0)
        y = _mish(acc + bp["conv2"]["bias"])
        p2 = p2 + y if use_residual else y
    part2 = p2.astype(jnp.bfloat16)

    wo = params["conv_out"]["w"][0, 0]
    out = _mish(pw(part1, wo[:half], 0.0) + pw(part2, wo[half:], 0.0)
                + params["conv_out"]["bias"])
    return jnp.transpose(out, (0, 3, 1, 2))


if __name__ == "__main__":
    in_channels, out_channels, repeats = 8, 8, 2
    use_residual = True
    N, H, W = 2, 16, 16            # W * C = 128 -> lane-dense slabs

    x = jax.random.normal(jax.random.PRNGKey(0), (N, in_channels, H, W), jnp.float32)
    params = init_csp_params(jax.random.PRNGKey(42), in_channels, out_channels, repeats)
    packed = pack_csp_params(params, W)

    fwd = jax.jit(functools.partial(csp_block_forward, packed=packed,
                                    use_residual=use_residual))
    out = fwd(x)
    jax.block_until_ready(out)
    assert out.shape == (N, out_channels, H, W), out.shape

    out_ref = _ref_forward(x, params, use_residual)
    max_err = float(jnp.max(jnp.abs(out - out_ref)))
    assert jnp.allclose(out, out_ref, atol=2e-3, rtol=2e-3), max_err

    print("KERNEL_OK")
</pallas_src>

<mosaic_0001>
module attributes {stable_mosaic.version = 11 : i64} {
  func.func @_concat_out_kernel(%arg0: i32, %arg1: memref<16x64xbf16, #tpu.memory_space<vmem>>, %arg2: memref<16x64xbf16, #tpu.memory_space<vmem>>, %arg3: memref<64x128xbf16, #tpu.memory_space<vmem>>, %arg4: memref<64x128xbf16, #tpu.memory_space<vmem>>, %arg5: memref<1x128xf32, #tpu.memory_space<vmem>>, %arg6: memref<16x128xf32, #tpu.memory_space<vmem>>) attributes {dimension_semantics = [#tpu.dimension_semantics<parallel>], iteration_bounds = array<i64: 2>, scalar_prefetch = 0 : i64, scratch_operands = 0 : i64, tpu.core_type = #tpu.core_type<tc>, window_params = [{transform_indices = @transform_0, window_bounds = array<i64: 16, 64>}, {transform_indices = @transform_1, window_bounds = array<i64: 16, 64>}, {pipeline_mode = #tpu.pipeline_mode<synchronous>, transform_indices = @transform_2, window_bounds = array<i64: 64, 128>}, {pipeline_mode = #tpu.pipeline_mode<synchronous>, transform_indices = @transform_3, window_bounds = array<i64: 64, 128>}, {pipeline_mode = #tpu.pipeline_mode<synchronous>, transform_indices = @transform_4, window_bounds = array<i64: 1, 128>}, {transform_indices = @transform_5, window_bounds = array<i64: 16, 128>}]} {
    %c0 = arith.constant 0 : index
    %c0_0 = arith.constant 0 : index
    %0 = vector.load %arg1[%c0, %c0_0] : memref<16x64xbf16, #tpu.memory_space<vmem>>, vector<16x64xbf16>
    %c0_1 = arith.constant 0 : index
    %c0_2 = arith.constant 0 : index
    %1 = vector.load %arg3[%c0_1, %c0_2] : memref<64x128xbf16, #tpu.memory_space<vmem>>, vector<64x128xbf16>
    %cst = arith.constant dense<0.000000e+00> : vector<16x128xf32>
    %2 = tpu.matmul %0, %1, %cst {dimension_numbers = #tpu.dot_dimension_numbers<[1], [0], [0], [1], [0, 0, 1, 1], [], []>} : vector<16x64xbf16>, vector<64x128xbf16>, vector<16x128xf32> -> vector<16x128xf32>
    %c0_3 = arith.constant 0 : index
    %c0_4 = arith.constant 0 : index
    %3 = vector.load %arg2[%c0_3, %c0_4] : memref<16x64xbf16, #tpu.memory_space<vmem>>, vector<16x64xbf16>
    %c0_5 = arith.constant 0 : index
    %c0_6 = arith.constant 0 : index
    %4 = vector.load %arg4[%c0_5, %c0_6] : memref<64x128xbf16, #tpu.memory_space<vmem>>, vector<64x128xbf16>
    %cst_7 = arith.constant dense<0.000000e+00> : vector<16x128xf32>
    %5 = tpu.matmul %3, %4, %cst_7 {dimension_numbers = #tpu.dot_dimension_numbers<[1], [0], [0], [1], [0, 0, 1, 1], [], []>} : vector<16x64xbf16>, vector<64x128xbf16>, vector<16x128xf32> -> vector<16x128xf32>
    %6 = arith.addf %2, %5 : vector<16x128xf32>
    %c0_8 = arith.constant 0 : index
    %c0_9 = arith.constant 0 : index
    %7 = vector.load %arg5[%c0_8, %c0_9] : memref<1x128xf32, #tpu.memory_space<vmem>>, vector<1x128xf32>
    %8 = vector.broadcast %7 : vector<1x128xf32> to vector<16x128xf32>
    %9 = arith.addf %6, %8 : vector<16x128xf32>
    %cst_10 = arith.constant 2.000000e+01 : f32
    %10 = vector.broadcast %cst_10 : f32 to vector<16x128xf32>
    %11 = arith.minimumf %9, %10 : vector<16x128xf32>
    %12 = math.exp %11 : vector<16x128xf32>
    %cst_11 = arith.constant 2.000000e+00 : f32
    %13 = vector.broadcast %cst_11 : f32 to vector<16x128xf32>
    %14 = arith.addf %12, %13 : vector<16x128xf32>
    %15 = arith.mulf %12, %14 : vector<16x128xf32>
    %cst_12 = arith.constant 2.000000e+01 : f32
    %16 = vector.broadcast %cst_12 : f32 to vector<16x128xf32>
    %17 = arith.cmpf ogt, %9, %16 : vector<16x128xf32>
    %cst_13 = arith.constant 2.000000e+00 : f32
    %18 = vector.broadcast %cst_13 : f32 to vector<16x128xf32>
    %19 = arith.addf %15, %18 : vector<16x128xf32>
    %20 = arith.divf %15, %19 : vector<16x128xf32>
    %21 = arith.mulf %9, %20 : vector<16x128xf32>
    %22 = arith.select %17, %9, %21 : vector<16x128xi1>, vector<16x128xf32>
    %c0_14 = arith.constant 0 : index
    %c0_15 = arith.constant 0 : index
    %23 = vector.load %arg6[%c0_14, %c0_15] : memref<16x128xf32, #tpu.memory_space<vmem>>, vector<16x128xf32>
    tpu.vector_store %arg6[%c0_14, %c0_15], %22 {strides = array<i32>} : memref<16x128xf32, #tpu.memory_space<vmem>>, vector<16x128xf32>,
    return
  }
  func.func @transform_0(%arg0: i32) -> (i32, i32) {
    %c0_i32 = arith.constant 0 : i32
    %c0_i32_0 = arith.constant 0 : i32
    return %arg0, %c0_i32 : i32, i32
  }
  func.func @transform_1(%arg0: i32) -> (i32, i32) {
    %c0_i32 = arith.constant 0 : i32
    %c0_i32_0 = arith.constant 0 : i32
    return %arg0, %c0_i32 : i32, i32
  }
  func.func @transform_2(%arg0: i32) -> (i32, i32) {
    %c0_i32 = arith.constant 0 : i32
    %c0_i32_0 = arith.constant 0 : i32
    %c0_i32_1 = arith.constant 0 : i32
    return %c0_i32, %c0_i32_0 : i32, i32
  }
  func.func @transform_3(%arg0: i32) -> (i32, i32) {
    %c0_i32 = arith.constant 0 : i32
    %c0_i32_0 = arith.constant 0 : i32
    %c0_i32_1 = arith.constant 0 : i32
    return %c0_i32, %c0_i32_0 : i32, i32
  }
  func.func @transform_4(%arg0: i32) -> (i32, i32) {
    %c0_i32 = arith.constant 0 : i32
    %c0_i32_0 = arith.constant 0 : i32
    %c0_i32_1 = arith.constant 0 : i32
    return %c0_i32, %c0_i32_0 : i32, i32
  }
  func.func @transform_5(%arg0: i32) -> (i32, i32) {
    %c0_i32 = arith.constant 0 : i32
    %c0_i32_0 = arith.constant 0 : i32
    return %arg0, %c0_i32 : i32, i32
  }
}

module attributes {stable_mosaic.version = 11 : i64} {
  func.func @_split_conv_kernel(%arg0: i32, %arg1: memref<16x128xbf16, #tpu.memory_space<vmem>>, %arg2: memref<128x64xbf16, #tpu.memory_space<vmem>>, %arg3: memref<1x64xf32, #tpu.memory_space<vmem>>, %arg4: memref<128x64xbf16, #tpu.memory_space<vmem>>, %arg5: memref<1x64xf32, #tpu.memory_space<vmem>>, %arg6: memref<16x64xbf16, #tpu.memory_space<vmem>>, %arg7: memref<16x64xbf16, #tpu.memory_space<vmem>>) attributes {dimension_semantics = [#tpu.dimension_semantics<parallel>], iteration_bounds = array<i64: 2>, scalar_prefetch = 0 : i64, scratch_operands = 0 : i64, tpu.core_type = #tpu.core_type<tc>, window_params = [{transform_indices = @transform_0, window_bounds = array<i64: 16, 128>}, {pipeline_mode = #tpu.pipeline_mode<synchronous>, transform_indices = @transform_1, window_bounds = array<i64: 128, 64>}, {pipeline_mode = #tpu.pipeline_mode<synchronous>, transform_indices = @transform_2, window_bounds = array<i64: 1, 64>}, {pipeline_mode = #tpu.pipeline_mode<synchronous>, transform_indices = @transform_3, window_bounds = array<i64: 128, 64>}, {pipeline_mode = #tpu.pipeline_mode<synchronous>, transform_indices = @transform_4, window_bounds = array<i64: 1, 64>}, {transform_indices = @transform_5, window_bounds = array<i64: 16, 64>}, {transform_indices = @transform_6, window_bounds = array<i64: 16, 64>}]} {
    %c0 = arith.constant 0 : index
    %c0_0 = arith.constant 0 : index
    %0 = vector.load %arg1[%c0, %c0_0] : memref<16x128xbf16, #tpu.memory_space<vmem>>, vector<16x128xbf16>
    %c0_1 = arith.constant 0 : index
    %c0_2 = arith.constant 0 : index
    %1 = vector.load %arg2[%c0_1, %c0_2] : memref<128x64xbf16, #tpu.memory_space<vmem>>, vector<128x64xbf16>
    %cst = arith.constant dense<0.000000e+00> : vector<16x64xf32>
    %2 = tpu.matmul %0, %1, %cst {dimension_numbers = #tpu.dot_dimension_numbers<[1], [0], [0], [1], [0, 0, 1, 1], [], []>} : vector<16x128xbf16>, vector<128x64xbf16>, vector<16x64xf32> -> vector<16x64xf32>
    %c0_3 = arith.constant 0 : index
    %c0_4 = arith.constant 0 : index
    %3 = vector.load %arg3[%c0_3, %c0_4] : memref<1x64xf32, #tpu.memory_space<vmem>>, vector<1x64xf32>
    %4 = vector.broadcast %3 : vector<1x64xf32> to vector<16x64xf32>
    %5 = arith.addf %2, %4 : vector<16x64xf32>
    %c0_5 = arith.constant 0 : index
    %c0_6 = arith.constant 0 : index
    %6 = vector.load %arg4[%c0_5, %c0_6] : memref<128x64xbf16, #tpu.memory_space<vmem>>, vector<128x64xbf16>
    %cst_7 = arith.constant dense<0.000000e+00> : vector<16x64xf32>
    %7 = tpu.matmul %0, %6, %cst_7 {dimension_numbers = #tpu.dot_dimension_numbers<[1], [0], [0], [1], [0, 0, 1, 1], [], []>} : vector<16x128xbf16>, vector<128x64xbf16>, vector<16x64xf32> -> vector<16x64xf32>
    %c0_8 = arith.constant 0 : index
    %c0_9 = arith.constant 0 : index
    %8 = vector.load %arg5[%c0_8, %c0_9] : memref<1x64xf32, #tpu.memory_space<vmem>>, vector<1x64xf32>
    %9 = vector.broadcast %8 : vector<1x64xf32> to vector<16x64xf32>
    %10 = arith.addf %7, %9 : vector<16x64xf32>
    %cst_10 = arith.constant 2.000000e+01 : f32
    %11 = vector.broadcast %cst_10 : f32 to vector<16x64xf32>
    %12 = arith.minimumf %5, %11 : vector<16x64xf32>
    %13 = math.exp %12 : vector<16x64xf32>
    %cst_11 = arith.constant 2.000000e+00 : f32
    %14 = vector.broadcast %cst_11 : f32 to vector<16x64xf32>
    %15 = arith.addf %13, %14 : vector<16x64xf32>
    %16 = arith.mulf %13, %15 : vector<16x64xf32>
    %cst_12 = arith.constant 2.000000e+01 : f32
    %17 = vector.broadcast %cst_12 : f32 to vector<16x64xf32>
    %18 = arith.cmpf ogt, %5, %17 : vector<16x64xf32>
    %cst_13 = arith.constant 2.000000e+00 : f32
    %19 = vector.broadcast %cst_13 : f32 to vector<16x64xf32>
    %20 = arith.addf %16, %19 : vector<16x64xf32>
    %21 = arith.divf %16, %20 : vector<16x64xf32>
    %22 = arith.mulf %5, %21 : vector<16x64xf32>
    %23 = arith.select %18, %5, %22 : vector<16x64xi1>, vector<16x64xf32>
    %24 = arith.truncf %23 : vector<16x64xf32> to vector<16x64xbf16>
    %c0_14 = arith.constant 0 : index
    %c0_15 = arith.constant 0 : index
    %25 = vector.load %arg6[%c0_14, %c0_15] : memref<16x64xbf16, #tpu.memory_space<vmem>>, vector<16x64xbf16>
    tpu.vector_store %arg6[%c0_14, %c0_15], %24 {strides = array<i32>} : memref<16x64xbf16, #tpu.memory_space<vmem>>, vector<16x64xbf16>,
    %cst_16 = arith.constant 2.000000e+01 : f32
    %26 = vector.broadcast %cst_16 : f32 to vector<16x64xf32>
    %27 = arith.minimumf %10, %26 : vector<16x64xf32>
    %28 = math.exp %27 : vector<16x64xf32>
    %cst_17 = arith.constant 2.000000e+00 : f32
    %29 = vector.broadcast %cst_17 : f32 to vector<16x64xf32>
    %30 = arith.addf %28, %29 : vector<16x64xf32>
    %31 = arith.mulf %28, %30 : vector<16x64xf32>
    %cst_18 = arith.constant 2.000000e+01 : f32
    %32 = vector.broadcast %cst_18 : f32 to vector<16x64xf32>
    %33 = arith.cmpf ogt, %10, %32 : vector<16x64xf32>
    %cst_19 = arith.constant 2.000000e+00 : f32
    %34 = vector.broadcast %cst_19 : f32 to vector<16x64xf32>
    %35 = arith.addf %31, %34 : vector<16x64xf32>
    %36 = arith.divf %31, %35 : vector<16x64xf32>
    %37 = arith.mulf %10, %36 : vector<16x64xf32>
    %38 = arith.select %33, %10, %37 : vector<16x64xi1>, vector<16x64xf32>
    %39 = arith.truncf %38 : vector<16x64xf32> to vector<16x64xbf16>
    %c0_20 = arith.constant 0 : index
    %c0_21 = arith.constant 0 : index
    %40 = vector.load %arg7[%c0_20, %c0_21] : memref<16x64xbf16, #tpu.memory_space<vmem>>, vector<16x64xbf16>
    tpu.vector_store %arg7[%c0_20, %c0_21], %39 {strides = array<i32>} : memref<16x64xbf16, #tpu.memory_space<vmem>>, vector<16x64xbf16>,
    return
  }
  func.func @transform_0(%arg0: i32) -> (i32, i32) {
    %c0_i32 = arith.constant 0 : i32
    %c0_i32_0 = arith.constant 0 : i32
    return %arg0, %c0_i32 : i32, i32
  }
  func.func @transform_1(%arg0: i32) -> (i32, i32) {
    %c0_i32 = arith.constant 0 : i32
    %c0_i32_0 = arith.constant 0 : i32
    %c0_i32_1 = arith.constant 0 : i32
    return %c0_i32, %c0_i32_0 : i32, i32
  }
  func.func @transform_2(%arg0: i32) -> (i32, i32) {
    %c0_i32 = arith.constant 0 : i32
    %c0_i32_0 = arith.constant 0 : i32
    %c0_i32_1 = arith.constant 0 : i32
    return %c0_i32, %c0_i32_0 : i32, i32
  }
  func.func @transform_3(%arg0: i32) -> (i32, i32) {
    %c0_i32 = arith.constant 0 : i32
    %c0_i32_0 = arith.constant 0 : i32
    %c0_i32_1 = arith.constant 0 : i32
    return %c0_i32, %c0_i32_0 : i32, i32
  }
  func.func @transform_4(%arg0: i32) -> (i32, i32) {
    %c0_i32 = arith.constant 0 : i32
    %c0_i32_0 = arith.constant 0 : i32
    %c0_i32_1 = arith.constant 0 : i32
    return %c0_i32, %c0_i32_0 : i32, i32
  }
  func.func @transform_5(%arg0: i32) -> (i32, i32) {
    %c0_i32 = arith.constant 0 : i32
    %c0_i32_0 = arith.constant 0 : i32
    return %arg0, %c0_i32 : i32, i32
  }
  func.func @transform_6(%arg0: i32) -> (i32, i32) {
    %c0_i32 = arith.constant 0 : i32
    %c0_i32_0 = arith.constant 0 : i32
    return %arg0, %c0_i32 : i32, i32
  }
}

module attributes {stable_mosaic.version = 11 : i64} {
  func.func @_bottleneck_kernel(%arg0: i32, %arg1: memref<1x16x64xbf16, #tpu.memory_space<vmem>>, %arg2: memref<2x64x32xbf16, #tpu.memory_space<vmem>>, %arg3: memref<2x1x32xf32, #tpu.memory_space<vmem>>, %arg4: memref<6x32x64xbf16, #tpu.memory_space<vmem>>, %arg5: memref<2x1x64xf32, #tpu.memory_space<vmem>>, %arg6: memref<1x16x64xbf16, #tpu.memory_space<vmem>>) attributes {dimension_semantics = [#tpu.dimension_semantics<parallel>], iteration_bounds = array<i64: 2>, scalar_prefetch = 0 : i64, scratch_operands = 0 : i64, tpu.core_type = #tpu.core_type<tc>, window_params = [{transform_indices = @transform_0, window_bounds = array<i64: 1, 16, 64>}, {pipeline_mode = #tpu.pipeline_mode<synchronous>, transform_indices = @transform_1, window_bounds = array<i64: 2, 64, 32>}, {pipeline_mode = #tpu.pipeline_mode<synchronous>, transform_indices = @transform_2, window_bounds = array<i64: 2, 1, 32>}, {pipeline_mode = #tpu.pipeline_mode<synchronous>, transform_indices = @transform_3, window_bounds = array<i64: 6, 32, 64>}, {pipeline_mode = #tpu.pipeline_mode<synchronous>, transform_indices = @transform_4, window_bounds = array<i64: 2, 1, 64>}, {transform_indices = @transform_5, window_bounds = array<i64: 1, 16, 64>}]} {
    %0 = tpu.iota {dimensions = array<i32: 0>} : vector<16x16xi32>
    %1 = tpu.iota {dimensions = array<i32: 1>} : vector<16x16xi32>
    %c1_i32 = arith.constant 1 : i32
    %2 = vector.broadcast %c1_i32 : i32 to vector<16x16xi32>
    %3 = arith.subi %0, %2 : vector<16x16xi32>
    %4 = arith.cmpi eq, %1, %3 : vector<16x16xi32>
    %5 = arith.extui %4 : vector<16x16xi1> to vector<16x16xi32>
    %6 = arith.sitofp %5 : vector<16x16xi32> to vector<16x16xf32>
    %7 = arith.truncf %6 : vector<16x16xf32> to vector<16x16xbf16>
    %c1_i32_0 = arith.constant 1 : i32
    %8 = vector.broadcast %c1_i32_0 : i32 to vector<16x16xi32>
    %9 = arith.addi %0, %8 : vector<16x16xi32>
    %10 = arith.cmpi eq, %1, %9 : vector<16x16xi32>
    %11 = arith.extui %10 : vector<16x16xi1> to vector<16x16xi32>
    %12 = arith.sitofp %11 : vector<16x16xi32> to vector<16x16xf32>
    %13 = arith.truncf %12 : vector<16x16xf32> to vector<16x16xbf16>
    %c0 = arith.constant 0 : index
    %c0_1 = arith.constant 0 : index
    %c0_2 = arith.constant 0 : index
    %14 = vector.load %arg1[%c0, %c0_1, %c0_2] : memref<1x16x64xbf16, #tpu.memory_space<vmem>>, vector<1x16x64xbf16>
    %15 = vector.shape_cast %14 : vector<1x16x64xbf16> to vector<16x64xbf16>
    %16 = arith.extf %15 : vector<16x64xbf16> to vector<16x64xf32>
    %17 = arith.truncf %16 : vector<16x64xf32> to vector<16x64xbf16>
    %c0_3 = arith.constant 0 : index
    %c0_4 = arith.constant 0 : index
    %c0_5 = arith.constant 0 : index
    %18 = vector.load %arg2[%c0_3, %c0_4, %c0_5] : memref<2x64x32xbf16, #tpu.memory_space<vmem>>, vector<1x64x32xbf16>
    %19 = vector.shape_cast %18 : vector<1x64x32xbf16> to vector<64x32xbf16>
    %cst = arith.constant dense<0.000000e+00> : vector<16x32xf32>
    %20 = tpu.matmul %17, %19, %cst {dimension_numbers = #tpu.dot_dimension_numbers<[1], [0], [0], [1], [0, 0, 1, 1], [], []>} : vector<16x64xbf16>, vector<64x32xbf16>, vector<16x32xf32> -> vector<16x32xf32>
    %c0_6 = arith.constant 0 : index
    %c0_7 = arith.constant 0 : index
    %c0_8 = arith.constant 0 : index
    %21 = vector.load %arg3[%c0_6, %c0_7, %c0_8] : memref<2x1x32xf32, #tpu.memory_space<vmem>>, vector<1x1x32xf32>
    %22 = vector.shape_cast %21 : vector<1x1x32xf32> to vector<1x32xf32>
    %23 = vector.broadcast %22 : vector<1x32xf32> to vector<16x32xf32>
    %24 = arith.addf %20, %23 : vector<16x32xf32>
    %cst_9 = arith.constant 2.000000e+01 : f32
    %25 = vector.broadcast %cst_9 : f32 to vector<16x32xf32>
    %26 = arith.minimumf %24, %25 : vector<16x32xf32>
    %27 = math.exp %26 : vector<16x32xf32>
    %cst_10 = arith.constant 2.000000e+00 : f32
    %28 = vector.broadcast %cst_10 : f32 to vector<16x32xf32>
    %29 = arith.addf %27, %28 : vector<16x32xf32>
    %30 = arith.mulf %27, %29 : vector<16x32xf32>
    %cst_11 = arith.constant 2.000000e+01 : f32
    %31 = vector.broadcast %cst_11 : f32 to vector<16x32xf32>
    %32 = arith.cmpf ogt, %24, %31 : vector<16x32xf32>
    %cst_12 = arith.constant 2.000000e+00 : f32
    %33 = vector.broadcast %cst_12 : f32 to vector<16x32xf32>
    %34 = arith.addf %30, %33 : vector<16x32xf32>
    %35 = arith.divf %30, %34 : vector<16x32xf32>
    %36 = arith.mulf %24, %35 : vector<16x32xf32>
    %37 = arith.select %32, %24, %36 : vector<16x32xi1>, vector<16x32xf32>
    %38 = arith.truncf %37 : vector<16x32xf32> to vector<16x32xbf16>
    %cst_13 = arith.constant dense<0.000000e+00> : vector<16x32xf32>
    %39 = tpu.matmul %7, %38, %cst_13 {dimension_numbers = #tpu.dot_dimension_numbers<[1], [0], [0], [1], [0, 0, 1, 1], [], []>} : vector<16x16xbf16>, vector<16x32xbf16>, vector<16x32xf32> -> vector<16x32xf32>
    %40 = arith.truncf %39 : vector<16x32xf32> to vector<16x32xbf16>
    %cst_14 = arith.constant dense<0.000000e+00> : vector<16x32xf32>
    %41 = tpu.matmul %13, %38, %cst_14 {dimension_numbers = #tpu.dot_dimension_numbers<[1], [0], [0], [1], [0, 0, 1, 1], [], []>} : vector<16x16xbf16>, vector<16x32xbf16>, vector<16x32xf32> -> vector<16x32xf32>
    %42 = arith.truncf %41 : vector<16x32xf32> to vector<16x32xbf16>
    %c0_15 = arith.constant 0 : index
    %c0_16 = arith.constant 0 : index
    %c0_17 = arith.constant 0 : index
    %43 = vector.load %arg4[%c0_15, %c0_16, %c0_17] : memref<6x32x64xbf16, #tpu.memory_space<vmem>>, vector<1x32x64xbf16>
    %44 = vector.shape_cast %43 : vector<1x32x64xbf16> to vector<32x64xbf16>
    %cst_18 = arith.constant dense<0.000000e+00> : vector<16x64xf32>
    %45 = tpu.matmul %40, %44, %cst_18 {dimension_numbers = #tpu.dot_dimension_numbers<[1], [0], [0], [1], [0, 0, 1, 1], [], []>} : vector<16x32xbf16>, vector<32x64xbf16>, vector<16x64xf32> -> vector<16x64xf32>
    %c1 = arith.constant 1 : index
    %c0_19 = arith.constant 0 : index
    %c0_20 = arith.constant 0 : index
    %46 = vector.load %arg4[%c1, %c0_19, %c0_20] : memref<6x32x64xbf16, #tpu.memory_space<vmem>>, vector<1x32x64xbf16>
    %47 = vector.shape_cast %46 : vector<1x32x64xbf16> to vector<32x64xbf16>
    %cst_21 = arith.constant dense<0.000000e+00> : vector<16x64xf32>
    %48 = tpu.matmul %38, %47, %cst_21 {dimension_numbers = #tpu.dot_dimension_numbers<[1], [0], [0], [1], [0, 0, 1, 1], [], []>} : vector<16x32xbf16>, vector<32x64xbf16>, vector<16x64xf32> -> vector<16x64xf32>
    %49 = arith.addf %45, %48 : vector<16x64xf32>
    %c2 = arith.constant 2 : index
    %c0_22 = arith.constant 0 : index
    %c0_23 = arith.constant 0 : index
    %50 = vector.load %arg4[%c2, %c0_22, %c0_23] : memref<6x32x64xbf16, #tpu.memory_space<vmem>>, vector<1x32x64xbf16>
    %51 = vector.shape_cast %50 : vector<1x32x64xbf16> to vector<32x64xbf16>
    %cst_24 = arith.constant dense<0.000000e+00> : vector<16x64xf32>
    %52 = tpu.matmul %42, %51, %cst_24 {dimension_numbers = #tpu.dot_dimension_numbers<[1], [0], [0], [1], [0, 0, 1, 1], [], []>} : vector<16x32xbf16>, vector<32x64xbf16>, vector<16x64xf32> -> vector<16x64xf32>
    %53 = arith.addf %49, %52 : vector<16x64xf32>
    %c0_25 = arith.constant 0 : index
    %c0_26 = arith.constant 0 : index
    %c0_27 = arith.constant 0 : index
    %54 = vector.load %arg5[%c0_25, %c0_26, %c0_27] : memref<2x1x64xf32, #tpu.memory_space<vmem>>, vector<1x1x64xf32>
    %55 = vector.shape_cast %54 : vector<1x1x64xf32> to vector<1x64xf32>
    %56 = vector.broadcast %55 : vector<1x64xf32> to vector<16x64xf32>
    %57 = arith.addf %53, %56 : vector<16x64xf32>
    %cst_28 = arith.constant 2.000000e+01 : f32
    %58 = vector.broadcast %cst_28 : f32 to vector<16x64xf32>
    %59 = arith.minimumf %57, %58 : vector<16x64xf32>
    %60 = math.exp %59 : vector<16x64xf32>
    %cst_29 = arith.constant 2.000000e+00 : f32
    %61 = vector.broadcast %cst_29 : f32 to vector<16x64xf32>
    %62 = arith.addf %60, %61 : vector<16x64xf32>
    %63 = arith.mulf %60, %62 : vector<16x64xf32>
    %cst_30 = arith.constant 2.000000e+01 : f32
    %64 = vector.broadcast %cst_30 : f32 to vector<16x64xf32>
    %65 = arith.cmpf ogt, %57, %64 : vector<16x64xf32>
    %cst_31 = arith.constant 2.000000e+00 : f32
    %66 = vector.broadcast %cst_31 : f32 to vector<16x64xf32>
    %67 = arith.addf %63, %66 : vector<16x64xf32>
    %68 = arith.divf %63, %67 : vector<16x64xf32>
    %69 = arith.mulf %57, %68 : vector<16x64xf32>
    %70 = arith.select %65, %57, %69 : vector<16x64xi1>, vector<16x64xf32>
    %71 = arith.addf %16, %70 : vector<16x64xf32>
    %72 = arith.truncf %71 : vector<16x64xf32> to vector<16x64xbf16>
    %c1_32 = arith.constant 1 : index
    %c0_33 = arith.constant 0 : index
    %c0_34 = arith.constant 0 : index
    %73 = vector.load %arg2[%c1_32, %c0_33, %c0_34] : memref<2x64x32xbf16, #tpu.memory_space<vmem>>, vector<1x64x32xbf16>
    %74 = vector.shape_cast %73 : vector<1x64x32xbf16> to vector<64x32xbf16>
    %cst_35 = arith.constant dense<0.000000e+00> : vector<16x32xf32>
    %75 = tpu.matmul %72, %74, %cst_35 {dimension_numbers = #tpu.dot_dimension_numbers<[1], [0], [0], [1], [0, 0, 1, 1], [], []>} : vector<16x64xbf16>, vector<64x32xbf16>, vector<16x32xf32> -> vector<16x32xf32>
    %c1_36 = arith.constant 1 : index
    %c0_37 = arith.constant 0 : index
    %c0_38 = arith.constant 0 : index
    %76 = vector.load %arg3[%c1_36, %c0_37, %c0_38] : memref<2x1x32xf32, #tpu.memory_space<vmem>>, vector<1x1x32xf32>
    %77 = vector.shape_cast %76 : vector<1x1x32xf32> to vector<1x32xf32>
    %78 = vector.broadcast %77 : vector<1x32xf32> to vector<16x32xf32>
    %79 = arith.addf %75, %78 : vector<16x32xf32>
    %cst_39 = arith.constant 2.000000e+01 : f32
    %80 = vector.broadcast %cst_39 : f32 to vector<16x32xf32>
    %81 = arith.minimumf %79, %80 : vector<16x32xf32>
    %82 = math.exp %81 : vector<16x32xf32>
    %cst_40 = arith.constant 2.000000e+00 : f32
    %83 = vector.broadcast %cst_40 : f32 to vector<16x32xf32>
    %84 = arith.addf %82, %83 : vector<16x32xf32>
    %85 = arith.mulf %82, %84 : vector<16x32xf32>
    %cst_41 = arith.constant 2.000000e+01 : f32
    %86 = vector.broadcast %cst_41 : f32 to vector<16x32xf32>
    %87 = arith.cmpf ogt, %79, %86 : vector<16x32xf32>
    %cst_42 = arith.constant 2.000000e+00 : f32
    %88 = vector.broadcast %cst_42 : f32 to vector<16x32xf32>
    %89 = arith.addf %85, %88 : vector<16x32xf32>
    %90 = arith.divf %85, %89 : vector<16x32xf32>
    %91 = arith.mulf %79, %90 : vector<16x32xf32>
    %92 = arith.select %87, %79, %91 : vector<16x32xi1>, vector<16x32xf32>
    %93 = arith.truncf %92 : vector<16x32xf32> to vector<16x32xbf16>
    %cst_43 = arith.constant dense<0.000000e+00> : vector<16x32xf32>
    %94 = tpu.matmul %7, %93, %cst_43 {dimension_numbers = #tpu.dot_dimension_numbers<[1], [0], [0], [1], [0, 0, 1, 1], [], []>} : vector<16x16xbf16>, vector<16x32xbf16>, vector<16x32xf32> -> vector<16x32xf32>
    %95 = arith.truncf %94 : vector<16x32xf32> to vector<16x32xbf16>
    %cst_44 = arith.constant dense<0.000000e+00> : vector<16x32xf32>
    %96 = tpu.matmul %13, %93, %cst_44 {dimension_numbers = #tpu.dot_dimension_numbers<[1], [0], [0], [1], [0, 0, 1, 1], [], []>} : vector<16x16xbf16>, vector<16x32xbf16>, vector<16x32xf32> -> vector<16x32xf32>
    %97 = arith.truncf %96 : vector<16x32xf32> to vector<16x32xbf16>
    %c3 = arith.constant 3 : index
    %c0_45 = arith.constant 0 : index
    %c0_46 = arith.constant 0 : index
    %98 = vector.load %arg4[%c3, %c0_45, %c0_46] : memref<6x32x64xbf16, #tpu.memory_space<vmem>>, vector<1x32x64xbf16>
    %99 = vector.shape_cast %98 : vector<1x32x64xbf16> to vector<32x64xbf16>
    %cst_47 = arith.constant dense<0.000000e+00> : vector<16x64xf32>
    %100 = tpu.matmul %95, %99, %cst_47 {dimension_numbers = #tpu.dot_dimension_numbers<[1], [0], [0], [1], [0, 0, 1, 1], [], []>} : vector<16x32xbf16>, vector<32x64xbf16>, vector<16x64xf32> -> vector<16x64xf32>
    %c4 = arith.constant 4 : index
    %c0_48 = arith.constant 0 : index
    %c0_49 = arith.constant 0 : index
    %101 = vector.load %arg4[%c4, %c0_48, %c0_49] : memref<6x32x64xbf16, #tpu.memory_space<vmem>>, vector<1x32x64xbf16>
    %102 = vector.shape_cast %101 : vector<1x32x64xbf16> to vector<32x64xbf16>
    %cst_50 = arith.constant dense<0.000000e+00> : vector<16x64xf32>
    %103 = tpu.matmul %93, %102, %cst_50 {dimension_numbers = #tpu.dot_dimension_numbers<[1], [0], [0], [1], [0, 0, 1, 1], [], []>} : vector<16x32xbf16>, vector<32x64xbf16>, vector<16x64xf32> -> vector<16x64xf32>
    %104 = arith.addf %100, %103 : vector<16x64xf32>
    %c5 = arith.constant 5 : index
    %c0_51 = arith.constant 0 : index
    %c0_52 = arith.constant 0 : index
    %105 = vector.load %arg4[%c5, %c0_51, %c0_52] : memref<6x32x64xbf16, #tpu.memory_space<vmem>>, vector<1x32x64xbf16>
    %106 = vector.shape_cast %105 : vector<1x32x64xbf16> to vector<32x64xbf16>
    %cst_53 = arith.constant dense<0.000000e+00> : vector<16x64xf32>
    %107 = tpu.matmul %97, %106, %cst_53 {dimension_numbers = #tpu.dot_dimension_numbers<[1], [0], [0], [1], [0, 0, 1, 1], [], []>} : vector<16x32xbf16>, vector<32x64xbf16>, vector<16x64xf32> -> vector<16x64xf32>
    %108 = arith.addf %104, %107 : vector<16x64xf32>
    %c1_54 = arith.constant 1 : index
    %c0_55 = arith.constant 0 : index
    %c0_56 = arith.constant 0 : index
    %109 = vector.load %arg5[%c1_54, %c0_55, %c0_56] : memref<2x1x64xf32, #tpu.memory_space<vmem>>, vector<1x1x64xf32>
    %110 = vector.shape_cast %109 : vector<1x1x64xf32> to vector<1x64xf32>
    %111 = vector.broadcast %110 : vector<1x64xf32> to vector<16x64xf32>
    %112 = arith.addf %108, %111 : vector<16x64xf32>
    %cst_57 = arith.constant 2.000000e+01 : f32
    %113 = vector.broadcast %cst_57 : f32 to vector<16x64xf32>
    %114 = arith.minimumf %112, %113 : vector<16x64xf32>
    %115 = math.exp %114 : vector<16x64xf32>
    %cst_58 = arith.constant 2.000000e+00 : f32
    %116 = vector.broadcast %cst_58 : f32 to vector<16x64xf32>
    %117 = arith.addf %115, %116 : vector<16x64xf32>
    %118 = arith.mulf %115, %117 : vector<16x64xf32>
    %cst_59 = arith.constant 2.000000e+01 : f32
    %119 = vector.broadcast %cst_59 : f32 to vector<16x64xf32>
    %120 = arith.cmpf ogt, %112, %119 : vector<16x64xf32>
    %cst_60 = arith.constant 2.000000e+00 : f32
    %121 = vector.broadcast %cst_60 : f32 to vector<16x64xf32>
    %122 = arith.addf %118, %121 : vector<16x64xf32>
    %123 = arith.divf %118, %122 : vector<16x64xf32>
    %124 = arith.mulf %112, %123 : vector<16x64xf32>
    %125 = arith.select %120, %112, %124 : vector<16x64xi1>, vector<16x64xf32>
    %126 = arith.addf %71, %125 : vector<16x64xf32>
    %127 = arith.truncf %126 : vector<16x64xf32> to vector<16x64xbf16>
    %c0_61 = arith.constant 0 : index
    %c0_62 = arith.constant 0 : index
    %c0_63 = arith.constant 0 : index
    %128 = vector.load %arg6[%c0_61, %c0_62, %c0_63] : memref<1x16x64xbf16, #tpu.memory_space<vmem>>, vector<1x16x64xbf16>
    %129 = vector.shape_cast %128 : vector<1x16x64xbf16> to vector<16x64xbf16>
    %130 = vector.shape_cast %127 : vector<16x64xbf16> to vector<1x16x64xbf16>
    tpu.vector_store %arg6[%c0_61, %c0_62, %c0_63], %130 {strides = array<i32>} : memref<1x16x64xbf16, #tpu.memory_space<vmem>>, vector<1x16x64xbf16>,
    return
  }
  func.func @transform_0(%arg0: i32) -> (i32, i32, i32) {
    %c0_i32 = arith.constant 0 : i32
    %c0_i32_0 = arith.constant 0 : i32
    %c0_i32_1 = arith.constant 0 : i32
    return %arg0, %c0_i32, %c0_i32_0 : i32, i32, i32
  }
  func.func @transform_1(%arg0: i32) -> (i32, i32, i32) {
    %c0_i32 = arith.constant 0 : i32
    %c0_i32_0 = arith.constant 0 : i32
    %c0_i32_1 = arith.constant 0 : i32
    %c0_i32_2 = arith.constant 0 : i32
    return %c0_i32, %c0_i32_0, %c0_i32_1 : i32, i32, i32
  }
  func.func @transform_2(%arg0: i32) -> (i32, i32, i32) {
    %c0_i32 = arith.constant 0 : i32
    %c0_i32_0 = arith.constant 0 : i32
    %c0_i32_1 = arith.constant 0 : i32
    %c0_i32_2 = arith.constant 0 : i32
    return %c0_i32, %c0_i32_0, %c0_i32_1 : i32, i32, i32
  }
  func.func @transform_3(%arg0: i32) -> (i32, i32, i32) {
    %c0_i32 = arith.constant 0 : i32
    %c0_i32_0 = arith.constant 0 : i32
    %c0_i32_1 = arith.constant 0 : i32
    %c0_i32_2 = arith.constant 0 : i32
    return %c0_i32, %c0_i32_0, %c0_i32_1 : i32, i32, i32
  }
  func.func @transform_4(%arg0: i32) -> (i32, i32, i32) {
    %c0_i32 = arith.constant 0 : i32
    %c0_i32_0 = arith.constant 0 : i32
    %c0_i32_1 = arith.constant 0 : i32
    %c0_i32_2 = arith.constant 0 : i32
    return %c0_i32, %c0_i32_0, %c0_i32_1 : i32, i32, i32
  }
  func.func @transform_5(%arg0: i32) -> (i32, i32, i32) {
    %c0_i32 = arith.constant 0 : i32
    %c0_i32_0 = arith.constant 0 : i32
    %c0_i32_1 = arith.constant 0 : i32
    return %arg0, %c0_i32, %c0_i32_0 : i32, i32, i32
  }
}

</mosaic_0001>

<bundles_post_ra>
// kernel: csp_block_forward.3
= control target key start
LH: loop header
LB: loop body
LE: loop exit
PB: predicated region body
PF: predicated region fallthrough
CT: control target
= control target key end

     0   :  { %s803_s21 = smov 0   ;;  %s941_s0 = inlined_call_operand.vmem [shape: bf16[32,128], index: 0, kind: input, shape index: {}]   ;;  %s942_s1 = inlined_call_operand.vmem [shape: bf16[128,64], index: 1, kind: input, shape index: {}]   ;;  %s943_s2 = inlined_call_operand.vmem [shape: f32[1,64], index: 2, kind: input, shape index: {}]   ;;  %s944_s3 = inlined_call_operand.vmem [shape: bf16[128,64], index: 3, kind: input, shape index: {}]   ;;  %s945_s4 = inlined_call_operand.vmem [shape: f32[1,64], index: 4, kind: input, shape index: {}]   ;;  %s946_s5 = inlined_call_operand.vmem [shape: bf16[32,64], index: 5, kind: output, shape index: {0}]   ;;  %s947_s6 = inlined_call_operand.vmem [shape: bf16[32,64], index: 6, kind: output, shape index: {1}]  }
   0x1 LB: > { %s636_s22 = sadd.s32 4294967295, %s766_s21   ;;  %p640_p0 = scmp.ge.s32.totalorder %s766_s21, 1  ;;  %s766_s21 = sphi %s803_s21, %s17_s21  }
   0x2   : > { %p216_p1 = scmp.lt.s32.totalorder %s766_s21, 3 }
   0x4   : > { %p217_p2 = pnand %p640_p0, %p216_p1 }
   0x5   : > { %s641_s15 = sshll.u32 (!%p217_p2), %s636_s22, 1 }
   0x6   : > { %220 = sbr.rel (%p217_p2) target bundleno = 222 (0xde), region = 40  ;;  %p252_p3 = scmp.lt.s32.totalorder (!%p217_p2), %s641_s15, 3 }
   0xb   : > { %v725_v0 = vld [vmem:[%s942_s1 + $0x38] sm:$0xff]  ;;  %v724_v2 = vld [vmem:[%s942_s1 + $0x30] sm:$0xff]  ;;  %v723_v4 = vld [vmem:[%s942_s1 + $0x28] sm:$0xff]  ;;  %s949_s15 = smov (!%p252_p3, %s641_s15), 3  ;;  %vm491_vm10 = vcmask 519168  }
   0xc   : > { %v733_v1 = vld [vmem:[%s944_s3 + $0x38] sm:$0xff]  ;;  %345 = vmatpush.bf16.msra.mxu0 %v725_v0  ;;  %v732_v3 = vld [vmem:[%s944_s3 + $0x30] sm:$0xff]  ;;  %v731_v5 = vld [vmem:[%s944_s3 + $0x28] sm:$0xff]  ;;  %s853_s29 = sshll.u32 %s949_s15, 2 }
   0xd   : > { %427 = vmatpush.bf16.msra.mxu1 %v733_v1  ;;  %v722_v6 = vld [vmem:[%s942_s1 + $0x20] sm:$0xff]  ;;  %v721_v8 = vld [vmem:[%s942_s1 + $0x18] sm:$0xff]  ;;  %v720_v10 = vld [vmem:[%s942_s1 + $0x10] sm:$0xff]  ;;  %s255_s12 = scalar_lea.vmem %s941_s0, %s853_s29  ;;  %s909_s19 = scalar_lea.vmem %s946_s5, %s853_s29 }
   0xe   : > { %v730_v7 = vld [vmem:[%s944_s3 + $0x20] sm:$0xff]  ;;  %v729_v9 = vld [vmem:[%s944_s3 + $0x18] sm:$0xff]  ;;  %v728_v11 = vld [vmem:[%s944_s3 + $0x10] sm:$0xff]  ;;  %s267_s24 = scalar_lea.vmem %s947_s6, %s853_s29 }
   0xf   : > { %v719_v12 = vld [vmem:[%s942_s1 + $0x8] sm:$0xff]  ;;  %v718_v14 = vld [vmem:[%s942_s1] sm:$0xff] }
  0x10   : > { %346 = vmatpush.bf16.msra.mxu0 %v724_v2  ;;  %v727_v13 = vld [vmem:[%s944_s3 + $0x8] sm:$0xff]  ;;  %v726_v15 = vld [vmem:[%s944_s3] sm:$0xff] }
  0x11   : > { %428 = vmatpush.bf16.msra.mxu1 %v732_v3  ;;  %v717_v16 = vld [vmem:[%s255_s12] sm:$0xff] }
  0x12   : > { %v742_v17 = vld [vmem:[%s943_s2] ss:$0 sm:$0xff] }
  0x13   : > { %v743_v18 = vld [vmem:[%s945_s4] ss:$0 sm:$0xff] }
  0x14   : > { %347 = vmatpush.bf16.msra.mxu0 %v723_v4 }
  0x15   : > { %429 = vmatpush.bf16.msra.mxu1 %v731_v5 }
  0x18   : > { %348 = vmatpush.bf16.msra.mxu0 %v722_v6 }
  0x19   : > { %430 = vmatpush.bf16.msra.mxu1 %v730_v7 }
  0x1c   : > { %349 = vmatpush.bf16.msra.mxu0 %v721_v8 }
  0x1d   : > { %431 = vmatpush.bf16.msra.mxu1 %v729_v9 }
  0x20   : > { %350 = vmatpush.bf16.msra.mxu0 %v720_v10 }
  0x21   : > { %432 = vmatpush.bf16.msra.mxu1 %v728_v11 }
  0x24   : > { %351 = vmatpush.bf16.msra.mxu0 %v719_v12 }
  0x25   : > { %433 = vmatpush.bf16.msra.mxu1 %v727_v13 }
  0x28   : > { %352 = vmatpush.bf16.msra.mxu0 %v718_v14 }
  0x29   : > { %434 = vmatpush.bf16.msra.mxu1 %v726_v15 }
  0x2b   : > { %353 = vmatmul.bf16.vlgmr.msra.gmra.mxu0 %v717_v16 }
  0x2c   : > { %435 = vmatmul.bf16.vlgmr.msra.gmra.mxu1 %v717_v16 }
  0xa8   : > { %v354_v19 = vpop.f32.mrf.mxu0 }
  0xa9   : > { %v436_v20 = vpop.f32.mrf.mxu1  ;;  %v871_v21 = vadd.f32 %v742_v17, %v354_v19 }
  0xaa   : > { %v873_v22 = vadd.f32 %v743_v18, %v436_v20 }
  0xab   : > { %v441_v23 = vmin.f32 %v871_v21, 20.0  ;;  %vm451_vm2 = vcmp.gt.f32.partialorder %v871_v21, 20.0 }
  0xac   : > { %v494_v24 = vmin.f32 %v873_v22, 20.0  ;;  %vm504_vm5 = vcmp.gt.f32.partialorder %v873_v22, 20.0 }
  0xad   : > { %v443_v25 = vmul.f32 1.442695, %v441_v23 }
  0xae   : > { %v496_v26 = vmul.f32 1.442695, %v494_v24 }
  0xaf   : > { %744 = vpow2.f32 %v443_v25 }
  0xb0   : > { %746 = vpow2.f32 %v496_v26  ;;  %v356_v27 = vpop.f32.mrf.mxu0 }
  0xb1   : > { %v438_v28 = vpop.f32.mrf.mxu1  ;;  %v877_v29 = vadd.f32 %v742_v17, %v356_v27 }
  0xb2   : > { %v879_v30 = vadd.f32 %v743_v18, %v438_v28 }
  0xb3   : > { %v442_v31 = vmin.f32 %v877_v29, 20.0 }
  0xb4   : > { %v495_v32 = vmin.f32 %v879_v30, 20.0 }
  0xb5   : > { %v745_v33 = vpop.eup %744  ;;  %v445_v34 = vmul.f32 1.442695, %v442_v31 }
  0xb6   : > { %v498_v35 = vmul.f32 1.442695, %v495_v32  ;;  %v747_v36 = vpop.eup %746  ;;  %v447_v37 = vadd.f32 2.0, %v745_v33 }
  0xb7   : > { %v500_v38 = vadd.f32 2.0, %v747_v36  ;;  %748 = vpow2.f32 %v445_v34 }
  0xb8   : > { %v449_v39 = vmul.f32 %v745_v33, %v447_v37  ;;  %750 = vpow2.f32 %v498_v35 }
  0xb9   : > { %v502_v40 = vmul.f32 %v747_v36, %v500_v38 }
  0xba   : > { %v453_v41 = vadd.f32 2.0, %v449_v39 }
  0xbb   : > { %v506_v42 = vadd.f32 2.0, %v502_v40 }
  0xbc   : > { %752 = vrcp.f32 %v453_v41  ;;  %v466_v56 = vand.u32 2147483648, %v453_v41  ;;  %v464_v59 = vand.u32 2147483647, %v453_v41  ;;  %vm460_vm3 = vweird.f32 %v453_v41 }
  0xbd   : > { %v749_v43 = vpop.eup %748  ;;  %754 = vrcp.f32 %v506_v42  ;;  %v519_v60 = vand.u32 2147483648, %v506_v42  ;;  %v517_v62 = vand.u32 2147483647, %v506_v42  ;;  %vm513_vm6 = vweird.f32 %v506_v42 }
  0xbe   : > { %v751_v44 = vpop.eup %750  ;;  %v448_v45 = vadd.f32 2.0, %v749_v43  ;;  %v467_v1 = vor.u32 1.1754944e-38, %v466_v56  ;;  %vm465_vm7 = vcmp.eq.f32.partialorder %v464_v59, 8.507059e+37 }
  0xbf   : > { %v501_v46 = vadd.f32 2.0, %v751_v44  ;;  %v520_v5 = vor.u32 1.1754944e-38, %v519_v60  ;;  %vm518_vm9 = vcmp.eq.f32.partialorder %v517_v62, 8.507059e+37 }
  0xc0   : > { %v883_v47 = vmul.f32 %v749_v43, %v448_v45 }
  0xc1   : > { %v885_v48 = vmul.f32 %v751_v44, %v501_v46 }
  0xc2   : > { %v753_v49 = vpop.eup %752  ;;  %v888_v50 = vadd.f32 2.0, %v883_v47 }
  0xc3   : > { %v755_v51 = vpop.eup %754  ;;  %v456_v52 = vmul.f32 %v753_v49, %v453_v41  ;;  %v891_v53 = vadd.f32 2.0, %v885_v48  ;;  %vm461_vm0 = vweird.f32 %v753_v49 }
  0xc4   : > { %v509_v54 = vmul.f32 %v755_v51, %v506_v42  ;;  %756 = vrcp.f32 %v888_v50  ;;  %vm514_vm1 = vweird.f32 %v755_v51  ;;  %vm462_vm4 = vmor %vm460_vm3, %vm461_vm0  ;;  %v479_v14 = vand.u32 2147483647, %v888_v50 }
  0xc5   : > { %v457_v55 = vsub.f32 1.0, %v456_v52  ;;  %758 = vrcp.f32 %v891_v53  ;;  %vm515_vm8 = vmor %vm513_vm6, %vm514_vm1  ;;  %v481_v15 = vand.u32 2147483648, %v888_v50  ;;  %v534_v19 = vand.u32 2147483648, %v891_v53 }
  0xc6   : > { %v510_v57 = vsub.f32 1.0, %v509_v54  ;;  %v532_v24 = vand.u32 2147483647, %v891_v53  ;;  %vm475_vm13 = vweird.f32 %v888_v50  ;;  %vm528_vm14 = vweird.f32 %v891_v53 }
  0xc7   : > { %v458_v58 = vmul.f32 %v753_v49, %v457_v55  ;;  %v482_v31 = vor.u32 1.1754944e-38, %v481_v15  ;;  %vm480_vm0 = vcmp.eq.f32.partialorder %v479_v14, 8.507059e+37  ;;  %vm452_vm3 = vcmp.gt.f32.partialorder %v877_v29, 20.0 }
  0xc8   : > { %v511_v61 = vmul.f32 %v755_v51, %v510_v57 }
  0xc9   : > { %v459_v63 = vadd.f32 %v753_v49, %v458_v58 }
  0xca   : > { %v757_v0 = vpop.eup %756  ;;  %v512_v2 = vadd.f32 %v755_v51, %v511_v61 }
  0xcb   : > { %v759_v3 = vpop.eup %758  ;;  %v463_v4 = vsel %vm462_vm4, %v753_v49, %v459_v63  ;;  %v471_v6 = vmul.f32 %v757_v0, %v888_v50  ;;  %vm476_vm11 = vweird.f32 %v757_v0  ;;  %vm505_vm4 = vcmp.gt.f32.partialorder %v879_v30, 20.0 }
  0xcc   : > { %v468_v7 = vsel %vm465_vm7, %v467_v1, %v463_v4  ;;  %v516_v8 = vsel %vm515_vm8, %v755_v51, %v512_v2  ;;  %v524_v9 = vmul.f32 %v759_v3, %v891_v53  ;;  %vm529_vm12 = vweird.f32 %v759_v3  ;;  %vm477_vm15 = vmor %vm475_vm13, %vm476_vm11 }
  0xcd   : > { %v469_v10 = vmul.f32 %v468_v7, %v449_v39  ;;  %v521_v11 = vsel %vm518_vm9, %v520_v5, %v516_v8  ;;  %v472_v12 = vsub.f32 1.0, %v471_v6  ;;  %vm530_vm1 = vmor %vm528_vm14, %vm529_vm12 }
  0xce   : > { %v522_v13 = vmul.f32 %v521_v11, %v502_v40  ;;  %v525_v16 = vsub.f32 1.0, %v524_v9 }
  0xcf   : > { %v485_v17 = vmul.f32 %v469_v10, %v871_v21  ;;  %v473_v18 = vmul.f32 %v757_v0, %v472_v12 }
  0xd0   : > { %v538_v20 = vmul.f32 %v522_v13, %v873_v22  ;;  %v526_v23 = vmul.f32 %v759_v3, %v525_v16 }
  0xd1   : > { %v487_v25 = vsel %vm451_vm2, %v871_v21, %v485_v17  ;;  %v474_v26 = vadd.f32 %v757_v0, %v473_v18  ;;  %v535_v21 = vor.u32 1.1754944e-38, %v534_v19  ;;  %vm533_vm2 = vcmp.eq.f32.partialorder %v532_v24, 8.507059e+37 }
  0xd2   : > { %v489_v27 = vpack.c.bf16 %v487_v25, %v487_v25  ;;  %v540_v28 = vsel %vm504_vm5, %v873_v22, %v538_v20  ;;  %v527_v32 = vadd.f32 %v759_v3, %v526_v23 }
  0xd3   : > { %v542_v33 = vpack.c.bf16 %v540_v28, %v540_v28  ;;  %v478_v34 = vsel %vm477_vm15, %v757_v0, %v474_v26 }
  0xd4   : > { %492 = vst.msk [vmem:[%s909_s19] sm:$0xf] %vm491_vm10, %v489_v27  ;;  %v483_v35 = vsel %vm480_vm0, %v482_v31, %v478_v34  ;;  %v531_v36 = vsel %vm530_vm1, %v759_v3, %v527_v32 }
  0xd5   : > { %544 = vst.msk [vmem:[%s267_s24] sm:$0xf] %vm491_vm10, %v542_v33  ;;  %v484_v37 = vmul.f32 %v483_v35, %v883_v47  ;;  %v536_v22 = vsel %vm533_vm2, %v535_v21, %v531_v36 }
  0xd6   : > { %v537_v38 = vmul.f32 %v536_v22, %v885_v48 }
  0xd7   : > { %v486_v39 = vmul.f32 %v484_v37, %v877_v29 }
  0xd8   : > { %v539_v40 = vmul.f32 %v537_v38, %v879_v30 }
  0xd9   : > { %v488_v41 = vsel %vm452_vm3, %v877_v29, %v486_v39 }
  0xda   : > { %v490_v42 = vpack.c.bf16 %v488_v41, %v488_v41  ;;  %v541_v43 = vsel %vm505_vm4, %v879_v30, %v539_v40 }
  0xdb   : > { %v543_v44 = vpack.c.bf16 %v541_v43, %v541_v43 }
  0xdc   : > { %493 = vst.msk [vmem:[%s909_s19 + $0x4] sm:$0xf] %vm491_vm10, %v490_v42 }
  0xdd   : > { %545 = vst.msk [vmem:[%s267_s24 + $0x4] sm:$0xf] %vm491_vm10, %v543_v44 }
  0xde PF: > { %s17_s21 = sadd.s32 1, %s766_s21  }
  0xdf   : > { %p14_p4 = scmp.ge.s32.totalorder %s17_s21, 4  }
  0xe1   :  { %16 = sbr.rel (!%p14_p4) target bundleno = 1 (0x1), region = 82 }

// kernel: csp_block_forward.5
= control target key start
LH: loop header
LB: loop body
LE: loop exit
PB: predicated region body
PF: predicated region fallthrough
CT: control target
= control target key end

     0   :  { %s608_s18 = smov 0   ;;  %s659_s0 = inlined_call_operand.vmem [shape: bf16[32,64], index: 0, kind: input, shape index: {}]   ;;  %s660_s1 = inlined_call_operand.vmem [shape: bf16[32,64], index: 1, kind: input, shape index: {}]   ;;  %s661_s2 = inlined_call_operand.vmem [shape: bf16[64,128], index: 2, kind: input, shape index: {}]   ;;  %s662_s3 = inlined_call_operand.vmem [shape: bf16[64,128], index: 3, kind: input, shape index: {}]   ;;  %s663_s4 = inlined_call_operand.vmem [shape: f32[1,128], index: 4, kind: input, shape index: {}]   ;;  %s664_s5 = inlined_call_operand.vmem [shape: f32[32,128], index: 5, kind: output, shape index: {}]  }
   0x1 LB: > { %s488_s19 = sadd.s32 4294967295, %s576_s18   ;;  %p492_p0 = scmp.ge.s32.totalorder %s576_s18, 1  ;;  %s576_s18 = sphi %s608_s18, %s15_s18  }
   0x2   : > { %p199_p1 = scmp.lt.s32.totalorder %s576_s18, 3 }
   0x4   : > { %p200_p2 = pnand %p492_p0, %p199_p1 }
   0x5   : > { %s493_s24 = sshll.u32 (!%p200_p2), %s488_s19, 1 }
   0x6   : > { %203 = sbr.rel (%p200_p2) target bundleno = 206 (0xce), region = 40  ;;  %p233_p3 = scmp.lt.s32.totalorder (!%p200_p2), %s493_s24, 3 }
   0xb   : > { %v552_v0 = vld [vmem:[%s662_s3 + $0x18] sm:$0xff]  ;;  %v551_v2 = vld [vmem:[%s662_s3 + $0x10] sm:$0xff]  ;;  %s666_s24 = smov (!%p233_p3, %s493_s24), 3  ;;  %v550_v4 = vld [vmem:[%s662_s3 + $0x8] sm:$0xff]  ;;  %vm300_vm0 = vcmask 523264  }
   0xc   : > { %v547_v1 = vld [vmem:[%s661_s2 + $0x18] sm:$0xff]  ;;  %308 = vmatpush.bf16.msra.mxu0 %v552_v0  ;;  %v546_v3 = vld [vmem:[%s661_s2 + $0x10] sm:$0xff]  ;;  %v545_v5 = vld [vmem:[%s661_s2 + $0x8] sm:$0xff]  ;;  %s494_s8 = sshll.u32 %s666_s24, 2  ;;  %s498_s22 = sshll.u32 %s666_s24, 3 }
   0xd   : > { %354 = vmatpush.bf16.msra.mxu1 %v547_v1  ;;  %v549_v6 = vld [vmem:[%s662_s3] sm:$0xff]  ;;  %s242_s15 = scalar_lea.vmem %s660_s1, %s494_s8  ;;  %s236_s19 = scalar_lea.vmem %s659_s0, %s494_s8 }
   0xe   : > { %v544_v7 = vld [vmem:[%s661_s2] sm:$0xff]  ;;  %s248_s26 = scalar_lea.vmem %s664_s5, %s498_s22 }
   0xf   : > { %v548_v8 = vld [vmem:[%s242_s15] sm:$0xff] }
  0x10   : > { %309 = vmatpush.bf16.msra.mxu0 %v551_v2  ;;  %v543_v9 = vld [vmem:[%s236_s19] sm:$0xff] }
  0x11   : > { %355 = vmatpush.bf16.msra.mxu1 %v546_v3  ;;  %v561_v10 = vld [vmem:[%s663_s4] ss:$0 sm:$0xff] }
  0x14   : > { %310 = vmatpush.bf16.msra.mxu0 %v550_v4 }
  0x15   : > { %356 = vmatpush.bf16.msra.mxu1 %v545_v5 }
  0x18   : > { %311 = vmatpush.bf16.msra.mxu0 %v549_v6 }
  0x19   : > { %357 = vmatpush.bf16.msra.mxu1 %v544_v7 }
  0x1b   : > { %519 = vmatmul.msk.bf16.vlgmr.msra.gmra.mxu0 %vm300_vm0, %v548_v8 }
  0x1c   : > { %540 = vmatmul.msk.bf16.vlgmr.msra.gmra.mxu1 %vm300_vm0, %v543_v9 }
  0x98   : > { %v313_v11 = vpop.f32.mrf.mxu0 }
  0x99   : > { %v359_v12 = vpop.f32.mrf.mxu1 }
  0x9a   : > { %v360_v13 = vadd.f32 %v359_v12, %v313_v11 }
  0x9c   : > { %v368_v14 = vadd.f32 %v561_v10, %v360_v13 }
  0x9e   : > { %v370_v15 = vmin.f32 %v368_v14, 20.0  ;;  %vm380_vm6 = vcmp.gt.f32.partialorder %v368_v14, 20.0 }
  0xa0   : > { %v372_v16 = vmul.f32 1.442695, %v370_v15  ;;  %v315_v17 = vpop.f32.mrf.mxu0 }
  0xa1   : > { %v361_v18 = vpop.f32.mrf.mxu1 }
  0xa2   : > { %562 = vpow2.f32 %v372_v16  ;;  %v362_v19 = vadd.f32 %v361_v18, %v315_v17 }
  0xa4   : > { %v369_v20 = vadd.f32 %v561_v10, %v362_v19 }
  0xa6   : > { %v371_v21 = vmin.f32 %v369_v20, 20.0  ;;  %vm381_vm10 = vcmp.gt.f32.partialorder %v369_v20, 20.0 }
  0xa8   : > { %v563_v22 = vpop.eup %562  ;;  %v374_v23 = vmul.f32 1.442695, %v371_v21 }
  0xa9   : > { %v376_v24 = vadd.f32 2.0, %v563_v22 }
  0xaa   : > { %564 = vpow2.f32 %v374_v23 }
  0xab   : > { %v378_v25 = vmul.f32 %v563_v22, %v376_v24 }
  0xad   : > { %v382_v26 = vadd.f32 2.0, %v378_v25 }
  0xaf   : > { %566 = vrcp.f32 %v382_v26  ;;  %v395_v34 = vand.u32 2147483648, %v382_v26  ;;  %v393_v36 = vand.u32 2147483647, %v382_v26  ;;  %vm389_vm2 = vweird.f32 %v382_v26 }
  0xb0   : > { %v565_v27 = vpop.eup %564 }
  0xb1   : > { %v377_v28 = vadd.f32 2.0, %v565_v27  ;;  %v396_v39 = vor.u32 1.1754944e-38, %v395_v34  ;;  %vm394_vm4 = vcmp.eq.f32.partialorder %v393_v36, 8.507059e+37 }
  0xb3   : > { %v379_v29 = vmul.f32 %v565_v27, %v377_v28 }
  0xb5   : > { %v567_v30 = vpop.eup %566  ;;  %v383_v31 = vadd.f32 2.0, %v379_v29 }
  0xb6   : > { %v385_v32 = vmul.f32 %v567_v30, %v382_v26  ;;  %vm390_vm1 = vweird.f32 %v567_v30 }
  0xb7   : > { %568 = vrcp.f32 %v383_v31  ;;  %vm391_vm3 = vmor %vm389_vm2, %vm390_vm1  ;;  %v410_v45 = vand.u32 2147483648, %v383_v31  ;;  %v408_v48 = vand.u32 2147483647, %v383_v31  ;;  %vm404_vm7 = vweird.f32 %v383_v31 }
  0xb8   : > { %v386_v33 = vsub.f32 1.0, %v385_v32 }
  0xb9   : > { %v411_v51 = vor.u32 1.1754944e-38, %v410_v45  ;;  %vm409_vm9 = vcmp.eq.f32.partialorder %v408_v48, 8.507059e+37 }
  0xba   : > { %v387_v35 = vmul.f32 %v567_v30, %v386_v33 }
  0xbc   : > { %v388_v37 = vadd.f32 %v567_v30, %v387_v35 }
  0xbd   : > { %v569_v38 = vpop.eup %568 }
  0xbe   : > { %v392_v40 = vsel %vm391_vm3, %v567_v30, %v388_v37  ;;  %v400_v41 = vmul.f32 %v569_v38, %v383_v31  ;;  %vm405_vm5 = vweird.f32 %v569_v38 }
  0xbf   : > { %v397_v42 = vsel %vm394_vm4, %v396_v39, %v392_v40  ;;  %vm406_vm8 = vmor %vm404_vm7, %vm405_vm5 }
  0xc0   : > { %v398_v43 = vmul.f32 %v397_v42, %v378_v25  ;;  %v401_v44 = vsub.f32 1.0, %v400_v41 }
  0xc2   : > { %v414_v46 = vmul.f32 %v398_v43, %v368_v14  ;;  %v402_v47 = vmul.f32 %v569_v38, %v401_v44 }
  0xc4   : > { %v416_v49 = vsel %vm380_vm6, %v368_v14, %v414_v46  ;;  %v403_v50 = vadd.f32 %v569_v38, %v402_v47 }
  0xc5   : > { %418 = vst [vmem:[%s248_s26] sm:$0xff] %v416_v49 }
  0xc6   : > { %v407_v52 = vsel %vm406_vm8, %v569_v38, %v403_v50 }
  0xc7   : > { %v412_v53 = vsel %vm409_vm9, %v411_v51, %v407_v52 }
  0xc8   : > { %v413_v54 = vmul.f32 %v412_v53, %v379_v29 }
  0xca   : > { %v415_v55 = vmul.f32 %v413_v54, %v369_v20 }
  0xcc   : > { %v417_v56 = vsel %vm381_vm10, %v369_v20, %v415_v55 }
  0xcd   : > { %419 = vst [vmem:[%s248_s26 + $0x8] sm:$0xff] %v417_v56 }
  0xce PF: > { %s15_s18 = sadd.s32 1, %s576_s18  }
  0xcf   : > { %p12_p4 = scmp.ge.s32.totalorder %s15_s18, 4  }
  0xd1   :  { %14 = sbr.rel (!%p12_p4) target bundleno = 1 (0x1), region = 73 }

// kernel: csp_block_forward.4
= control target key start
LH: loop header
LB: loop body
LE: loop exit
PB: predicated region body
PF: predicated region fallthrough
CT: control target
= control target key end

     0   :  { %s1164_s18 = smov 0   ;;  %s1310_s0 = inlined_call_operand.vmem [shape: bf16[2,16,64], index: 0, kind: input, shape index: {}]   ;;  %s1311_s1 = inlined_call_operand.vmem [shape: bf16[2,64,32], index: 1, kind: input, shape index: {}]   ;;  %s1312_s2 = inlined_call_operand.vmem [shape: f32[2,1,32], index: 2, kind: input, shape index: {}]   ;;  %s1313_s3 = inlined_call_operand.vmem [shape: bf16[6,32,64], index: 3, kind: input, shape index: {}]   ;;  %s1314_s4 = inlined_call_operand.vmem [shape: f32[2,1,64], index: 4, kind: input, shape index: {}]   ;;  %s1315_s5 = inlined_call_operand.vmem [shape: bf16[2,16,64], index: 5, kind: output, shape index: {}]  }
   0x1 LB: > { %s914_s19 = sadd.s32 4294967295, %s1131_s18   ;;  %p918_p0 = scmp.ge.s32.totalorder %s1131_s18, 1  ;;  %s1131_s18 = sphi %s1164_s18, %s15_s18  }
   0x2   : > { %p187_p1 = scmp.lt.s32.totalorder %s1131_s18, 3 }
   0x4   : > { %p188_p2 = pnand %p918_p0, %p187_p1 }
   0x5   : > { %p215_p3 = scmp.lt.s32.totalorder (!%p188_p2), %s914_s19, 1 }
   0x6   : > { %191 = sbr.rel (%p188_p2) target bundleno = 1048 (0x418), region = 40 }
   0xb   : > { %v1063_v0 = vld [vmem:[%s1311_s1 + $0x18] sm:$0xff]  ;;  %v1062_v1 = vld [vmem:[%s1311_s1 + $0x10] sm:$0xff]  ;;  %s1317_s19 = smov (!%p215_p3, %s914_s19), 1  ;;  %v1061_v2 = vld [vmem:[%s1311_s1 + $0x8] sm:$0xff]  ;;  %vm294_vm0 = vcmask 523264   ;;  %v226_v26 = vlaneseq  ;;  %v1133_v56 = vmov 0.0  }
   0xc   : > { %302 = vmatpush.bf16.msra.mxu0 %v1063_v0  ;;  %s1057_s26 = sshll.u32 %s1317_s19, 3  ;;  %v1060_v3 = vld [vmem:[%s1311_s1] sm:$0xff]  ;;  %v1067_v13 = vld [vmem:[%s1313_s3 + $0x18] sm:$0xff]  ;;  %v1066_v17 = vld [vmem:[%s1313_s3 + $0x10] sm:$0xff]  ;;  %vm419_vm15 = vcmask 261120  }
   0xd   : > { %s1192_s6 = scalar_lea.vmem %s1310_s0, %s1057_s26  ;;  %v1089_v5 = vld [vmem:[%s1312_s2] ss:$0 sm:$0xff]  ;;  %429 = vmatpush.bf16.msra.mxu3 %v1067_v13  ;;  %v227_v30 = vshrl.u32 %v226_v26, 7  ;;  %v230_v43 = vand.u32 127, %v226_v26  ;;  %s224_s30 = scalar_lea.vmem %s1315_s5, %s1057_s26 }
   0xe   : > { %v1059_v4 = vld [vmem:[%s1192_s6] sm:$0xff] }
   0xf   : > { %v228_v37 = vadd.s32 8, %v227_v30  ;;  %v923_v44 = vadd.s32 4294967295, %v227_v30  ;;  %v240_v46 = vadd.s32 1, %v227_v30 }
  0x10   : > { %303 = vmatpush.bf16.msra.mxu0 %v1062_v1 }
  0x11   : > { %430 = vmatpush.bf16.msra.mxu3 %v1066_v17  ;;  %v924_v45 = vadd.s32 4294967295, %v228_v37  ;;  %v241_v49 = vadd.s32 1, %v228_v37  ;;  %vm233_vm9 = vcmp.eq.s32.totalorder %v230_v43, %v923_v44  ;;  %vm242_vm11 = vcmp.eq.s32.totalorder %v230_v43, %v240_v46 }
  0x12   : > { %v925_v57 = vsel %vm233_vm9, 1.0, %v1133_v56  ;;  %v927_v59 = vsel %vm242_vm11, 1.0, %v1133_v56 }
  0x13   : > { %vm234_vm10 = vcmp.eq.s32.totalorder %v230_v43, %v924_v45  ;;  %vm243_vm12 = vcmp.eq.s32.totalorder %v230_v43, %v241_v49 }
  0x14   : > { %304 = vmatpush.bf16.msra.mxu0 %v1061_v2  ;;  %v926_v58 = vsel %vm234_vm10, 1.0, %v1133_v56  ;;  %v928_v60 = vsel %vm243_vm12, 1.0, %v1133_v56  ;;  %v1065_v2 = vld [vmem:[%s1313_s3 + $0x8] sm:$0xff] }
  0x15   : > { %v1217_v0 = vpack.c.bf16 %v926_v58, %v925_v57  ;;  %v1219_v1 = vpack.c.bf16 %v928_v60, %v927_v59 }
  0x18   : > { %305 = vmatpush.bf16.msra.mxu0 %v1060_v3  ;;  %v1064_v3 = vld [vmem:[%s1313_s3] sm:$0xff] }
  0x1b   : > { %949 = vmatmul.msk.bf16.vlgmr.msra.gmra.mxu0 %vm294_vm0, %v1059_v4  ;;  %v1069_v4 = vld [vmem:[%s1313_s3 + $0x28] sm:$0xff] }
  0x98   : > { %v307_v6 = vpop.f32.mrf.mxu0 }
  0x99   : > { %v1199_v7 = vadd.f32 %v1089_v5, %v307_v6 }
  0x9b   : > { %v312_v8 = vmin.f32 %v1199_v7, 20.0  ;;  %vm322_vm13 = vcmp.gt.f32.partialorder %v1199_v7, 20.0 }
  0x9d   : > { %v314_v9 = vmul.f32 1.442695, %v312_v8 }
  0x9f   : > { %1093 = vpow2.f32 %v314_v9 }
  0xa0   : > { %v309_v10 = vpop.f32.mrf.mxu0 }
  0xa1   : > { %v1202_v11 = vadd.f32 %v1089_v5, %v309_v10  ;;  %v1068_v5 = vld [vmem:[%s1313_s3 + $0x20] sm:$0xff] }
  0xa3   : > { %v313_v12 = vmin.f32 %v1202_v11, 20.0  ;;  %vm323_vm14 = vcmp.gt.f32.partialorder %v1202_v11, 20.0 }
  0xa5   : > { %v1094_v14 = vpop.eup %1093  ;;  %v316_v15 = vmul.f32 1.442695, %v313_v12 }
  0xa6   : > { %v318_v16 = vadd.f32 2.0, %v1094_v14 }
  0xa7   : > { %1095 = vpow2.f32 %v316_v15  ;;  %v1090_v15 = vld [vmem:[%s1314_s4] ss:$0 sm:$0xff] }
  0xa8   : > { %v320_v18 = vmul.f32 %v1094_v14, %v318_v16 }
  0xaa   : > { %v324_v19 = vadd.f32 2.0, %v320_v18 }
  0xac   : > { %1097 = vrcp.f32 %v324_v19  ;;  %v337_v29 = vand.u32 2147483648, %v324_v19  ;;  %vm331_vm2 = vweird.f32 %v324_v19  ;;  %v335_v32 = vand.u32 2147483647, %v324_v19 }
  0xad   : > { %v1096_v20 = vpop.eup %1095 }
  0xae   : > { %v319_v21 = vadd.f32 2.0, %v1096_v20  ;;  %v338_v36 = vor.u32 1.1754944e-38, %v337_v29  ;;  %vm336_vm4 = vcmp.eq.f32.partialorder %v335_v32, 8.507059e+37 }
  0xb0   : > { %v321_v22 = vmul.f32 %v1096_v20, %v319_v21 }
  0xb2   : > { %v1098_v23 = vpop.eup %1097  ;;  %v325_v24 = vadd.f32 2.0, %v321_v22 }
  0xb3   : > { %v327_v25 = vmul.f32 %v1098_v23, %v324_v19  ;;  %vm332_vm1 = vweird.f32 %v1098_v23 }
  0xb4   : > { %1099 = vrcp.f32 %v325_v24  ;;  %vm333_vm3 = vmor %vm331_vm2, %vm332_vm1  ;;  %v352_v40 = vand.u32 2147483648, %v325_v24  ;;  %v350_v42 = vand.u32 2147483647, %v325_v24  ;;  %vm346_vm6 = vweird.f32 %v325_v24 }
  0xb5   : > { %v328_v27 = vsub.f32 1.0, %v327_v25  ;;  %vm361_vm1 = vcmask 130048   ;;  %v1073_v25 = vld [vmem:[%s1311_s1 + $0x38] sm:$0xff] }
  0xb6   : > { %v353_v50 = vor.u32 1.1754944e-38, %v352_v40  ;;  %vm351_vm8 = vcmp.eq.f32.partialorder %v350_v42, 8.507059e+37  ;;  %604 = vmatpush.bf16.msrb.mxu3 %v1073_v25 }
  0xb7   : > { %v329_v28 = vmul.f32 %v1098_v23, %v328_v27 }
  0xb9   : > { %v330_v31 = vadd.f32 %v1098_v23, %v329_v28  ;;  %v1072_v28 = vld [vmem:[%s1311_s1 + $0x30] sm:$0xff] }
  0xba   : > { %v1100_v33 = vpop.eup %1099  ;;  %605 = vmatpush.bf16.msrb.mxu3 %v1072_v28 }
  0xbb   : > { %v334_v34 = vsel %vm333_vm3, %v1098_v23, %v330_v31  ;;  %v342_v35 = vmul.f32 %v1100_v33, %v325_v24  ;;  %vm347_vm5 = vweird.f32 %v1100_v33 }
  0xbc   : > { %v339_v39 = vsel %vm336_vm4, %v338_v36, %v334_v34  ;;  %vm348_vm7 = vmor %vm346_vm6, %vm347_vm5 }
  0xbd   : > { %v343_v38 = vsub.f32 1.0, %v342_v35  ;;  %v340_v47 = vmul.f32 %v339_v39, %v320_v18  ;;  %v1070_v35 = vld [vmem:[%s1311_s1 + $0x20] sm:$0xff] }
  0xbf   : > { %v344_v41 = vmul.f32 %v1100_v33, %v343_v38  ;;  %v356_v53 = vmul.f32 %v340_v47, %v1199_v7 }
  0xc1   : > { %v345_v48 = vadd.f32 %v1100_v33, %v344_v41  ;;  %v358_v61 = vsel %vm322_vm13, %v1199_v7, %v356_v53 }
  0xc3   : > { %v349_v51 = vsel %vm348_vm7, %v1100_v33, %v345_v48  ;;  %v1071_v33 = vld [vmem:[%s1311_s1 + $0x28] sm:$0xff] }
  0xc4   : > { %v354_v52 = vsel %vm351_vm8, %v353_v50, %v349_v51  ;;  %606 = vmatpush.bf16.msrb.mxu3 %v1071_v33 }
  0xc5   : > { %v355_v54 = vmul.f32 %v354_v52, %v321_v22 }
  0xc7   : > { %v357_v55 = vmul.f32 %v355_v54, %v1202_v11 }
  0xc8   : > { %607 = vmatpush.bf16.msrb.mxu3 %v1070_v35 }
  0xc9   : > { %v359_v62 = vsel %vm323_vm14, %v1202_v11, %v357_v55 }
  0xca   : > { %v360_v63 = vpack.c.bf16 %v359_v62, %v358_v61  ;;  %v249_v62 = vld [vmem:[%s1192_s6] sm:$0xff]  }
  0xcc   : > { %372 = vmatpush.bf16.msra.mxu1 %v360_v63  ;;  %390 = vmatpush.bf16.msra.mxu2 %v360_v63 }
  0xcd   : > { %964 = vmatmul.msk.bf16.vlgmr.msra.gmra.mxu3 %vm419_vm15, %v360_v63 }
  0xcf   : > { %950 = vmatmul.msk.bf16.vlgmr.msra.gmra.mxu1 %vm361_vm1, %v1217_v0  ;;  %951 = vmatmul.msk.bf16.vlgmr.msra.gmra.mxu2 %vm361_vm1, %v1219_v1 }
  0xd0   : > { %458 = vmatpush.bf16.msrb.mxu1 %v1065_v2  ;;  %492 = vmatpush.bf16.msrb.mxu2 %v1069_v4  ;;  %v252_v4 = vunpack.c.h.bf16 %v249_v62 }
  0xd4   : > { %459 = vmatpush.bf16.msrb.mxu1 %v1064_v3  ;;  %493 = vmatpush.bf16.msrb.mxu2 %v1068_v5  ;;  %v251_v3 = vunpack.c.l.bf16 %v249_v62 }
 0x14c   : > { %v374_v6 = vpop.f32.mrf.mxu1 }
 0x150   : > { %v432_v13 = vpop.f32.mrf.mxu3 }
 0x152   : > { %v392_v7 = vpop.f32.mrf.mxu2 }
 0x154   : > { %v376_v8 = vpop.f32.mrf.mxu1 }
 0x155   : > { %v379_v9 = vpack.c.bf16 %v376_v8, %v374_v6 }
 0x157   : > { %973 = vmatmul.msk.bf16.vlgmr.msrb.gmra.mxu1 %vm419_vm15, %v379_v9 }
 0x158   : > { %v434_v21 = vpop.f32.mrf.mxu3 }
 0x15a   : > { %v394_v10 = vpop.f32.mrf.mxu2 }
 0x15b   : > { %v397_v11 = vpack.c.bf16 %v394_v10, %v392_v7 }
 0x15d   : > { %986 = vmatmul.msk.bf16.vlgmr.msrb.gmra.mxu2 %vm419_vm15, %v397_v11  ;;  %v1091_v11 = vld [vmem:[%s1312_s2 + $0x1] ss:$0 sm:$0xff] }
 0x1d4   : > { %v461_v12 = vpop.f32.mrf.mxu1 }
 0x1d5   : > { %v462_v14 = vadd.f32 %v461_v12, %v432_v13 }
 0x1dc   : > { %v463_v19 = vpop.f32.mrf.mxu1 }
 0x1dd   : > { %v464_v22 = vadd.f32 %v463_v19, %v434_v21  ;;  %v1077_v19 = vld [vmem:[%s1313_s3 + $0x48] sm:$0xff] }
 0x1de   : > { %724 = vmatpush.bf16.msra.mxu2 %v1077_v19 }
 0x1e0   : > { %v495_v16 = vpop.f32.mrf.mxu2 }
 0x1e1   : > { %v500_v17 = vadd.f32 %v495_v16, %v462_v14 }
 0x1e3   : > { %v1243_v18 = vadd.f32 %v1090_v15, %v500_v17 }
 0x1e5   : > { %v508_v20 = vmin.f32 %v1243_v18, 20.0  ;;  %vm518_vm10 = vcmp.gt.f32.partialorder %v1243_v18, 20.0 }
 0x1e7   : > { %v510_v23 = vmul.f32 1.442695, %v508_v20 }
 0x1e8   : > { %v497_v24 = vpop.f32.mrf.mxu2 }
 0x1e9   : > { %1101 = vpow2.f32 %v510_v23  ;;  %v501_v26 = vadd.f32 %v497_v24, %v464_v22  ;;  %v1076_v23 = vld [vmem:[%s1313_s3 + $0x40] sm:$0xff] }
 0x1ea   : > { %725 = vmatpush.bf16.msra.mxu2 %v1076_v23 }
 0x1eb   : > { %v507_v27 = vadd.f32 %v1090_v15, %v501_v26 }
 0x1ed   : > { %v509_v29 = vmin.f32 %v507_v27, 20.0  ;;  %vm519_vm11 = vcmp.gt.f32.partialorder %v507_v27, 20.0 }
 0x1ef   : > { %v1102_v30 = vpop.eup %1101  ;;  %v512_v31 = vmul.f32 1.442695, %v509_v29 }
 0x1f0   : > { %v514_v32 = vadd.f32 2.0, %v1102_v30 }
 0x1f1   : > { %1103 = vpow2.f32 %v512_v31 }
 0x1f2   : > { %v516_v34 = vmul.f32 %v1102_v30, %v514_v32 }
 0x1f4   : > { %v520_v36 = vadd.f32 2.0, %v516_v34 }
 0x1f6   : > { %1105 = vrcp.f32 %v520_v36  ;;  %v533_v44 = vand.u32 2147483648, %v520_v36  ;;  %v531_v46 = vand.u32 2147483647, %v520_v36  ;;  %vm527_vm3 = vweird.f32 %v520_v36 }
 0x1f7   : > { %v1104_v37 = vpop.eup %1103 }
 0x1f8   : > { %v515_v38 = vadd.f32 2.0, %v1104_v37  ;;  %v534_v49 = vor.u32 1.1754944e-38, %v533_v44  ;;  %vm532_vm5 = vcmp.eq.f32.partialorder %v531_v46, 8.507059e+37 }
 0x1fa   : > { %v517_v39 = vmul.f32 %v1104_v37, %v515_v38 }
 0x1fc   : > { %v1106_v40 = vpop.eup %1105  ;;  %v521_v41 = vadd.f32 2.0, %v517_v39 }
 0x1fd   : > { %v523_v42 = vmul.f32 %v1106_v40, %v520_v36  ;;  %vm528_vm2 = vweird.f32 %v1106_v40 }
 0x1fe   : > { %1107 = vrcp.f32 %v521_v41  ;;  %vm529_vm4 = vmor %vm527_vm3, %vm528_vm2  ;;  %v548_v54 = vand.u32 2147483648, %v521_v41  ;;  %v546_v57 = vand.u32 2147483647, %v521_v41  ;;  %vm542_vm7 = vweird.f32 %v521_v41 }
 0x1ff   : > { %v524_v43 = vsub.f32 1.0, %v523_v42 }
 0x200   : > { %v549_v59 = vor.u32 1.1754944e-38, %v548_v54  ;;  %vm547_vm9 = vcmp.eq.f32.partialorder %v546_v57, 8.507059e+37  ;;  %v1075_v57 = vld [vmem:[%s1313_s3 + $0x38] sm:$0xff] }
 0x201   : > { %v525_v45 = vmul.f32 %v1106_v40, %v524_v43  ;;  %753 = vmatpush.bf16.msra.mxu3 %v1075_v57 }
 0x203   : > { %v526_v47 = vadd.f32 %v1106_v40, %v525_v45 }
 0x204   : > { %v1108_v48 = vpop.eup %1107 }
 0x205   : > { %v530_v50 = vsel %vm529_vm4, %v1106_v40, %v526_v47  ;;  %v538_v51 = vmul.f32 %v1108_v48, %v521_v41  ;;  %vm543_vm6 = vweird.f32 %v1108_v48 }
 0x206   : > { %v535_v52 = vsel %vm532_vm5, %v534_v49, %v530_v50  ;;  %vm544_vm8 = vmor %vm542_vm7, %vm543_vm6 }
 0x207   : > { %v539_v53 = vsub.f32 1.0, %v538_v51  ;;  %v536_v55 = vmul.f32 %v535_v52, %v516_v34 }
 0x209   : > { %v540_v56 = vmul.f32 %v1108_v48, %v539_v53  ;;  %v552_v60 = vmul.f32 %v536_v55, %v1243_v18 }
 0x20b   : > { %v541_v58 = vadd.f32 %v1108_v48, %v540_v56  ;;  %v554_v6 = vsel %vm518_vm10, %v1243_v18, %v552_v60 }
 0x20c   : > { %v1262_v8 = vadd.f32 %v554_v6, %v251_v3 }
 0x20d   : > { %v545_v61 = vsel %vm544_vm8, %v1108_v48, %v541_v58  ;;  %v1079_v58 = vld [vmem:[%s1313_s3 + $0x58] sm:$0xff] }
 0x20e   : > { %v550_v63 = vsel %vm547_vm9, %v549_v59, %v545_v61  ;;  %v1074_v59 = vld [vmem:[%s1313_s3 + $0x30] sm:$0xff] }
 0x20f   : > { %v551_v2 = vmul.f32 %v550_v63, %v517_v39  ;;  %754 = vmatpush.bf16.msra.mxu3 %v1074_v59 }
 0x211   : > { %v553_v5 = vmul.f32 %v551_v2, %v507_v27 }
 0x213   : > { %v555_v7 = vsel %vm519_vm11, %v507_v27, %v553_v5 }
 0x214   : > { %v1264_v9 = vadd.f32 %v555_v7, %v252_v4  ;;  %v1092_v7 = vld [vmem:[%s1314_s4 + $0x1] ss:$0 sm:$0xff] }
 0x216   : > { %v558_v10 = vpack.c.bf16 %v1264_v9, %v1262_v8 }
 0x218   : > { %1012 = vmatmul.msk.bf16.vlgmr.msrb.gmra.mxu3 %vm294_vm0, %v558_v10 }
 0x29b   : > { %v609_v12 = vpop.f32.mrf.mxu3 }
 0x29c   : > { %v610_v13 = vadd.f32 %v1091_v11, %v609_v12 }
 0x29e   : > { %v614_v14 = vmin.f32 %v610_v13, 20.0  ;;  %vm624_vm6 = vcmp.gt.f32.partialorder %v610_v13, 20.0 }
 0x2a0   : > { %v616_v15 = vmul.f32 1.442695, %v614_v14 }
 0x2a2   : > { %1109 = vpow2.f32 %v616_v15 }
 0x2a3   : > { %v611_v16 = vpop.f32.mrf.mxu3 }
 0x2a4   : > { %v612_v17 = vadd.f32 %v1091_v11, %v611_v16 }
 0x2a6   : > { %v615_v18 = vmin.f32 %v612_v17, 20.0  ;;  %vm625_vm7 = vcmp.gt.f32.partialorder %v612_v17, 20.0 }
 0x2a8   : > { %v1110_v20 = vpop.eup %1109  ;;  %v618_v21 = vmul.f32 1.442695, %v615_v18 }
 0x2a9   : > { %v620_v22 = vadd.f32 2.0, %v1110_v20 }
 0x2aa   : > { %1111 = vpow2.f32 %v618_v21 }
 0x2ab   : > { %v622_v24 = vmul.f32 %v1110_v20, %v620_v22 }
 0x2ad   : > { %v626_v25 = vadd.f32 2.0, %v622_v24 }
 0x2af   : > { %1113 = vrcp.f32 %v626_v25  ;;  %v639_v34 = vand.u32 2147483648, %v626_v25  ;;  %vm633_vm12 = vweird.f32 %v626_v25  ;;  %v637_v36 = vand.u32 2147483647, %v626_v25 }
 0x2b0   : > { %v1112_v26 = vpop.eup %1111 }
 0x2b1   : > { %v621_v27 = vadd.f32 2.0, %v1112_v26  ;;  %v640_v40 = vor.u32 1.1754944e-38, %v639_v34  ;;  %vm638_vm14 = vcmp.eq.f32.partialorder %v637_v36, 8.507059e+37 }
 0x2b3   : > { %v623_v28 = vmul.f32 %v1112_v26, %v621_v27 }
 0x2b5   : > { %v1114_v29 = vpop.eup %1113  ;;  %v627_v30 = vadd.f32 2.0, %v623_v28 }
 0x2b6   : > { %v629_v31 = vmul.f32 %v1114_v29, %v626_v25  ;;  %vm634_vm0 = vweird.f32 %v1114_v29 }
 0x2b7   : > { %1115 = vrcp.f32 %v627_v30  ;;  %vm635_vm13 = vmor %vm633_vm12, %vm634_vm0  ;;  %v654_v43 = vand.u32 2147483648, %v627_v30  ;;  %v652_v45 = vand.u32 2147483647, %v627_v30  ;;  %vm648_vm3 = vweird.f32 %v627_v30 }
 0x2b8   : > { %v630_v32 = vsub.f32 1.0, %v629_v31 }
 0x2b9   : > { %v655_v48 = vor.u32 1.1754944e-38, %v654_v43  ;;  %vm653_vm5 = vcmp.eq.f32.partialorder %v652_v45, 8.507059e+37 }
 0x2ba   : > { %v631_v33 = vmul.f32 %v1114_v29, %v630_v32 }
 0x2bc   : > { %v632_v35 = vadd.f32 %v1114_v29, %v631_v33 }
 0x2bd   : > { %v1116_v37 = vpop.eup %1115 }
 0x2be   : > { %v636_v38 = vsel %vm635_vm13, %v1114_v29, %v632_v35  ;;  %v644_v39 = vmul.f32 %v1116_v37, %v627_v30  ;;  %vm649_vm2 = vweird.f32 %v1116_v37  ;;  %vm856_vm13 = vcmask 519168  }
 0x2bf   : > { %v641_v42 = vsel %vm638_vm14, %v640_v40, %v636_v38  ;;  %vm650_vm4 = vmor %vm648_vm3, %vm649_vm2 }
 0x2c0   : > { %v645_v41 = vsub.f32 1.0, %v644_v39  ;;  %v642_v46 = vmul.f32 %v641_v42, %v622_v24 }
 0x2c2   : > { %v646_v44 = vmul.f32 %v1116_v37, %v645_v41  ;;  %v658_v51 = vmul.f32 %v642_v46, %v610_v13 }
 0x2c4   : > { %v647_v47 = vadd.f32 %v1116_v37, %v646_v44  ;;  %v660_v54 = vsel %vm624_vm6, %v610_v13, %v658_v51 }
 0x2c6   : > { %v651_v49 = vsel %vm650_vm4, %v1116_v37, %v647_v47 }
 0x2c7   : > { %v656_v50 = vsel %vm653_vm5, %v655_v48, %v651_v49 }
 0x2c8   : > { %v657_v52 = vmul.f32 %v656_v50, %v623_v28 }
 0x2ca   : > { %v659_v53 = vmul.f32 %v657_v52, %v612_v17 }
 0x2cc   : > { %v661_v55 = vsel %vm625_vm7, %v612_v17, %v659_v53 }
 0x2cd   : > { %v662_v56 = vpack.c.bf16 %v661_v55, %v660_v54 }
 0x2cf   : > { %670 = vmatpush.bf16.msrb.mxu0 %v662_v56  ;;  %685 = vmatpush.bf16.msra.mxu1 %v662_v56 }
 0x2d0   : > { %1031 = vmatmul.msk.bf16.vlgmr.msra.gmra.mxu2 %vm419_vm15, %v662_v56 }
 0x2d2   : > { %1013 = vmatmul.msk.bf16.vlgmr.msrb.gmra.mxu0 %vm361_vm1, %v1217_v0  ;;  %1014 = vmatmul.msk.bf16.vlgmr.msra.gmra.mxu1 %vm361_vm1, %v1219_v1  ;;  %v1078_v0 = vld [vmem:[%s1313_s3 + $0x50] sm:$0xff] }
 0x2d3   : > { %787 = vmatpush.bf16.msra.mxu0 %v1079_v58 }
 0x2d7   : > { %788 = vmatpush.bf16.msra.mxu0 %v1078_v0 }
 0x34f   : > { %v672_v1 = vpop.f32.mrf.mxu0  ;;  %v687_v60 = vpop.f32.mrf.mxu1 }
 0x353   : > { %v727_v3 = vpop.f32.mrf.mxu2 }
 0x357   : > { %v674_v61 = vpop.f32.mrf.mxu0  ;;  %v689_v62 = vpop.f32.mrf.mxu1 }
 0x358   : > { %v677_v63 = vpack.c.bf16 %v674_v61, %v672_v1  ;;  %v692_v2 = vpack.c.bf16 %v689_v62, %v687_v60 }
 0x35a   : > { %1040 = vmatmul.msk.bf16.vlgmr.msra.gmra.mxu3 %vm419_vm15, %v677_v63  ;;  %1053 = vmatmul.msk.bf16.vlgmr.msra.gmra.mxu0 %vm419_vm15, %v692_v2 }
 0x35b   : > { %v729_v13 = vpop.f32.mrf.mxu2 }
 0x3d7   : > { %v790_v4 = vpop.f32.mrf.mxu0 }
 0x3dd   : > { %v756_v5 = vpop.f32.mrf.mxu3 }
 0x3de   : > { %v757_v6 = vadd.f32 %v756_v5, %v727_v3 }
 0x3df   : > { %v792_v17 = vpop.f32.mrf.mxu0 }
 0x3e0   : > { %v795_v10 = vadd.f32 %v790_v4, %v757_v6 }
 0x3e2   : > { %v802_v11 = vadd.f32 %v1092_v7, %v795_v10 }
 0x3e4   : > { %v804_v12 = vmin.f32 %v802_v11, 20.0  ;;  %vm814_vm11 = vcmp.gt.f32.partialorder %v802_v11, 20.0 }
 0x3e5   : > { %v758_v14 = vpop.f32.mrf.mxu3 }
 0x3e6   : > { %v806_v15 = vmul.f32 1.442695, %v804_v12  ;;  %v759_v16 = vadd.f32 %v758_v14, %v729_v13 }
 0x3e8   : > { %1117 = vpow2.f32 %v806_v15  ;;  %v796_v18 = vadd.f32 %v792_v17, %v759_v16 }
 0x3ea   : > { %v803_v19 = vadd.f32 %v1092_v7, %v796_v18 }
 0x3ec   : > { %v805_v20 = vmin.f32 %v803_v19, 20.0  ;;  %vm815_vm2 = vcmp.gt.f32.partialorder %v803_v19, 20.0 }
 0x3ee   : > { %v1118_v21 = vpop.eup %1117  ;;  %v808_v22 = vmul.f32 1.442695, %v805_v20 }
 0x3ef   : > { %v810_v23 = vadd.f32 2.0, %v1118_v21 }
 0x3f0   : > { %1119 = vpow2.f32 %v808_v22 }
 0x3f1   : > { %v812_v24 = vmul.f32 %v1118_v21, %v810_v23 }
 0x3f3   : > { %v816_v25 = vadd.f32 2.0, %v812_v24 }
 0x3f5   : > { %1121 = vrcp.f32 %v816_v25  ;;  %v829_v33 = vand.u32 2147483648, %v816_v25  ;;  %v827_v35 = vand.u32 2147483647, %v816_v25  ;;  %vm823_vm1 = vweird.f32 %v816_v25 }
 0x3f6   : > { %v1120_v26 = vpop.eup %1119 }
 0x3f7   : > { %v811_v27 = vadd.f32 2.0, %v1120_v26  ;;  %v830_v38 = vor.u32 1.1754944e-38, %v829_v33  ;;  %vm828_vm9 = vcmp.eq.f32.partialorder %v827_v35, 8.507059e+37 }
 0x3f9   : > { %v813_v28 = vmul.f32 %v1120_v26, %v811_v27 }
 0x3fb   : > { %v1122_v29 = vpop.eup %1121  ;;  %v817_v30 = vadd.f32 2.0, %v813_v28 }
 0x3fc   : > { %v819_v31 = vmul.f32 %v1122_v29, %v816_v25  ;;  %vm824_vm15 = vweird.f32 %v1122_v29 }
 0x3fd   : > { %1123 = vrcp.f32 %v817_v30  ;;  %vm825_vm8 = vmor %vm823_vm1, %vm824_vm15  ;;  %v844_v44 = vand.u32 2147483648, %v817_v30  ;;  %v842_v47 = vand.u32 2147483647, %v817_v30  ;;  %vm838_vm0 = vweird.f32 %v817_v30 }
 0x3fe   : > { %v820_v32 = vsub.f32 1.0, %v819_v31 }
 0x3ff   : > { %v845_v51 = vor.u32 1.1754944e-38, %v844_v44  ;;  %vm843_vm14 = vcmp.eq.f32.partialorder %v842_v47, 8.507059e+37 }
 0x400   : > { %v821_v34 = vmul.f32 %v1122_v29, %v820_v32 }
 0x402   : > { %v822_v36 = vadd.f32 %v1122_v29, %v821_v34 }
 0x403   : > { %v1124_v37 = vpop.eup %1123 }
 0x404   : > { %v826_v39 = vsel %vm825_vm8, %v1122_v29, %v822_v36  ;;  %v834_v40 = vmul.f32 %v1124_v37, %v817_v30  ;;  %vm839_vm10 = vweird.f32 %v1124_v37 }
 0x405   : > { %v831_v41 = vsel %vm828_vm9, %v830_v38, %v826_v39  ;;  %vm840_vm12 = vmor %vm838_vm0, %vm839_vm10 }
 0x406   : > { %v832_v42 = vmul.f32 %v831_v41, %v812_v24  ;;  %v835_v43 = vsub.f32 1.0, %v834_v40 }
 0x408   : > { %v848_v45 = vmul.f32 %v832_v42, %v802_v11  ;;  %v836_v46 = vmul.f32 %v1124_v37, %v835_v43 }
 0x40a   : > { %v850_v48 = vsel %vm814_vm11, %v802_v11, %v848_v45  ;;  %v837_v49 = vadd.f32 %v1124_v37, %v836_v46 }
 0x40b   : > { %v852_v50 = vadd.f32 %v850_v48, %v1262_v8 }
 0x40c   : > { %v841_v52 = vsel %vm840_vm12, %v1124_v37, %v837_v49 }
 0x40d   : > { %v854_v53 = vpack.c.bf16 %v852_v50, %v852_v50  ;;  %v846_v54 = vsel %vm843_vm14, %v845_v51, %v841_v52 }
 0x40e   : > { %v847_v55 = vmul.f32 %v846_v54, %v813_v28 }
 0x40f   : > { %857 = vst.msk [vmem:[%s224_s30] sm:$0xf] %vm856_vm13, %v854_v53 }
 0x410   : > { %v849_v56 = vmul.f32 %v847_v55, %v803_v19 }
 0x412   : > { %v851_v57 = vsel %vm815_vm2, %v803_v19, %v849_v56 }
 0x413   : > { %v853_v58 = vadd.f32 %v851_v57, %v1264_v9 }
 0x415   : > { %v855_v8 = vpack.c.bf16 %v853_v58, %v853_v58 }
 0x417   : > { %858 = vst.msk [vmem:[%s224_s30 + $0x4] sm:$0xf] %vm856_vm13, %v855_v8 }
 0x418 PF: > { %s15_s18 = sadd.s32 1, %s1131_s18  }
 0x419   : > { %p12_p4 = scmp.ge.s32.totalorder %s15_s18, 4  }
 0x41b   :  { %14 = sbr.rel (!%p12_p4) target bundleno = 1 (0x1), region = 78 }

</bundles_post_ra>
